<compile_context>
chip_gen: v7x
topology: tpu7x:2x2x1
jax: 0.10.0
libtpu: 0.0.40
codegen_flags: <defaults>
</compile_context>

<pallas_src>
import functools

import numpy as np
import jax
import jax.numpy as jnp
from jax import lax
from jax.experimental import pallas as pl
from jax.experimental.pallas import tpu as pltpu


def _neg_sentinel(dtype):
    if jnp.issubdtype(dtype, jnp.floating):
        return jnp.asarray(jnp.finfo(dtype).min, dtype)
    return jnp.asarray(jnp.iinfo(dtype).min, dtype)


def _roi_pool_kernel_nchw(S, HB, ridx_ref, slot_ref, rs_ref, re_ref,
                          cs_ref, ce_ref, img_ref, out_ref):
    """Small-C path. img_ref: (1, C, H, W); out_ref: (1, C, S, S).

    W rides the lane axis, H the sublane axis. Rows are band-sliced with a
    dynamic pl.ds of HB rows; columns use a lane mask + one lane reduce.
    """
    del ridx_ref, slot_ref  # only used in the index_maps
    i = pl.program_id(0)
    _, C, H, W = img_ref.shape
    neg = _neg_sentinel(img_ref.dtype)
    base = i * S

    h_iota = lax.broadcasted_iota(jnp.int32, (HB, W), 0)   # row-in-band (sublane)
    w_iota = lax.broadcasted_iota(jnp.int32, (1, W), 1)    # column index (lane)

    oh_rows = []
    for oh in range(S):                      # static unroll: S is tiny (4..7)
        rs = rs_ref[base + oh]
        re_ = re_ref[base + oh]
        rs_l = jnp.maximum(jnp.minimum(rs, H - HB), 0)      # clamped load start
        band = img_ref[0, :, pl.ds(rs_l, HB), :]            # (C, HB, W)
        row = h_iota + rs_l                                  # absolute row index
        rmask = (row >= rs) & (row < re_)                    # (HB, W)
        tmp = jnp.max(jnp.where(rmask[None], band, neg), axis=1)   # (C, W)
        cols = []
        for ow in range(S):
            cs = cs_ref[base + ow]
            ce = ce_ref[base + ow]
            csel = (w_iota >= cs) & (w_iota < ce)            # (1, W)
            cols.append(jnp.max(jnp.where(csel, tmp, neg),
                                axis=1, keepdims=True))      # (C, 1)
        oh_rows.append(jnp.concatenate(cols, axis=1))        # (C, S)
    out_ref[0] = jnp.stack(oh_rows, axis=1)                  # (C, S, S) single store


def _roi_pool_kernel_nhwc(S, HB, WB, ridx_ref, slot_ref, rs_ref, re_ref,
                          cs_ref, ce_ref, img_ref, out_ref):
    """Lane-dense path (C % 128 == 0). img_ref: (1, H, W, C); out: (1, S, S, C).

    Both the H band (major dim) and the W band (sublane dim) are ref-sliced per
    bin, so each bin touches only ~HB*WB*C elements; only band tails are masked.
    """
    del ridx_ref, slot_ref
    i = pl.program_id(0)
    _, H, W, C = img_ref.shape
    neg = _neg_sentinel(img_ref.dtype)
    base = i * S

    r_iota = lax.broadcasted_iota(jnp.int32, (HB, WB), 0)
    c_iota = lax.broadcasted_iota(jnp.int32, (HB, WB), 1)

    rows = []
    for oh in range(S):
        rs = rs_ref[base + oh]
        re_ = re_ref[base + oh]
        rs_l = jnp.maximum(jnp.minimum(rs, H - HB), 0)
        rmask = ((r_iota + rs_l) >= rs) & ((r_iota + rs_l) < re_)     # (HB, WB)
        cols = []
        for ow in range(S):
            cs = cs_ref[base + ow]
            ce = ce_ref[base + ow]
            cs_l = jnp.maximum(jnp.minimum(cs, W - WB), 0)
            cmask = ((c_iota + cs_l) >= cs) & ((c_iota + cs_l) < ce)  # (HB, WB)
            band = img_ref[0, pl.ds(rs_l, HB), pl.ds(cs_l, WB), :]    # (HB, WB, C)
            sel = (rmask & cmask)[:, :, None]
            v = jnp.where(sel, band, neg)
            v = jnp.max(jnp.max(v, axis=1), axis=0)                   # (C,)
            cols.append(v)
        rows.append(jnp.stack(cols, axis=0))                          # (S, C)
    out_ref[0] = jnp.stack(rows, axis=0)                              # (S, S, C)


def slow_roi_pool(images, rois_np, roi_idx_np, output_size):
    """images: jnp (N, C, H, W); rois_np: np (n, 4) normalized x1,y1,x2,y2;
    roi_idx_np: np (n,) ints; returns jnp (n, C, S, S)."""
    N, C, H, W = images.shape
    n = int(rois_np.shape[0])
    S = int(output_size)

    # ---- host-side index math (same semantics as the PyTorch module) ----
    x1 = np.floor(rois_np[:, 0] * W).astype(np.int64)
    y1 = np.floor(rois_np[:, 1] * H).astype(np.int64)
    x2 = np.ceil(rois_np[:, 2] * W).astype(np.int64)
    y2 = np.ceil(rois_np[:, 3] * H).astype(np.int64)
    # Python slicing clips to array bounds; additionally clamp degenerate ROIs
    # to a 1-pixel crop so every adaptive-pool bin is non-empty.
    x1 = np.clip(x1, 0, W - 1)
    y1 = np.clip(y1, 0, H - 1)
    x2 = np.clip(x2, x1 + 1, W)
    y2 = np.clip(y2, y1 + 1, H)
    cw = x2 - x1
    ch = y2 - y1

    # AdaptiveMaxPool2d bin edges: start = floor(o*L/S), end = ceil((o+1)*L/S)
    o = np.arange(S)
    r_start = (y1[:, None] + (o[None, :] * ch[:, None]) // S).astype(np.int32)
    r_end = (y1[:, None] + ((o[None, :] + 1) * ch[:, None] + S - 1) // S).astype(np.int32)
    c_start = (x1[:, None] + (o[None, :] * cw[:, None]) // S).astype(np.int32)
    c_end = (x1[:, None] + ((o[None, :] + 1) * cw[:, None] + S - 1) // S).astype(np.int32)

    # Sort ROIs by image index so consecutive grid steps reuse the image DMA.
    # Each grid step i scatters its result directly to original slot order[i].
    order = np.argsort(np.asarray(roi_idx_np), kind="stable").astype(np.int32)
    roi_idx_s = np.asarray(roi_idx_np, dtype=np.int32)[order]
    out_slot = order
    r_start, r_end = r_start[order], r_end[order]
    c_start, c_end = c_start[order], c_end[order]

    # Static band extents: max bin length is ceil(L/S)+1 <= ceil(full/S)+1.
    HB = min(-(-H // S) + 1, H)
    WB = min(-(-W // S) + 1, W)

    # Flattened (n*S,) int32 SMEM scalars (1-D avoids 2-D SMEM padding blowup).
    scalars = (
        jnp.asarray(roi_idx_s),
        jnp.asarray(out_slot),
        jnp.asarray(r_start.reshape(-1)),
        jnp.asarray(r_end.reshape(-1)),
        jnp.asarray(c_start.reshape(-1)),
        jnp.asarray(c_end.reshape(-1)),
    )

    in_map = lambda i, ridx, slot, rs, re, cs, ce: (ridx[i], 0, 0, 0)
    out_map = lambda i, ridx, slot, rs, re, cs, ce: (slot[i], 0, 0, 0)

    dsize = np.dtype(images.dtype).itemsize
    uniq = int(np.unique(np.asarray(roi_idx_np)).size)
    lane_dense = (C % 128 == 0)

    if lane_dense:
        # Channels-last so C rides the 128-wide lane axis (lane-dense stores).
        imgs = jnp.transpose(images, (0, 2, 3, 1))               # (N, H, W, C)
        kernel = functools.partial(_roi_pool_kernel_nhwc, S, HB, WB)
        in_spec = pl.BlockSpec((1, H, W, C), in_map)
        out_spec = pl.BlockSpec((1, S, S, C), out_map)
        out_shape = jax.ShapeDtypeStruct((n, S, S, C), images.dtype)
        flops = 4 * n * S * S * HB * WB * C
    else:
        # Small C: stay NCHW (no host transpose); W rides the lane axis.
        imgs = images
        kernel = functools.partial(_roi_pool_kernel_nchw, S, HB)
        in_spec = pl.BlockSpec((1, C, H, W), in_map)
        out_spec = pl.BlockSpec((1, C, S, S), out_map)
        out_shape = jax.ShapeDtypeStruct((n, C, S, S), images.dtype)
        flops = 4 * n * S * C * W * (HB + S)

    cost = pl.CostEstimate(
        flops=int(flops),
        transcendentals=0,
        bytes_accessed=int((uniq * C * H * W + n * C * S * S) * dsize),
    )

    grid_spec = pltpu.PrefetchScalarGridSpec(
        num_scalar_prefetch=6,
        grid=(n,),
        in_specs=[in_spec],
        out_specs=out_spec,
    )

    out = pl.pallas_call(
        kernel,
        out_shape=out_shape,
        grid_spec=grid_spec,
        compiler_params=pltpu.CompilerParams(
            dimension_semantics=("parallel",)),
        cost_estimate=cost,
    )(*scalars, imgs)

    if lane_dense:
        # Tiny (n, S, S, C) -> (n, C, S, S); negligible vs. the kernel work.
        out = jnp.transpose(out, (0, 3, 1, 2))
    return out


def _numpy_reference(images_np, rois_np, roi_idx_np, S):
    N, C, H, W = images_np.shape
    n = rois_np.shape[0]
    x1 = np.floor(rois_np[:, 0] * W).astype(int)
    y1 = np.floor(rois_np[:, 1] * H).astype(int)
    x2 = np.ceil(rois_np[:, 2] * W).astype(int)
    y2 = np.ceil(rois_np[:, 3] * H).astype(int)
    out = np.zeros((n, C, S, S), dtype=images_np.dtype)
    for i in range(n):
        crop = images_np[roi_idx_np[i]][:, y1[i]:y2[i], x1[i]:x2[i]]
        ch, cw = crop.shape[1], crop.shape[2]
        for oh in range(S):
            hs, he = (oh * ch) // S, -((-(oh + 1) * ch) // S)
            for ow in range(S):
                ws, we = (ow * cw) // S, -((-(ow + 1) * cw) // S)
                out[i, :, oh, ow] = crop[:, hs:he, ws:we].max(axis=(1, 2))
    return out


if __name__ == "__main__":
    # Small shapes consistent with the module's forward.
    B, C, H, W = 2, 4, 16, 16
    n_rois = 8
    output_size = 4

    key = jax.random.PRNGKey(0)
    k_img, k_a, k_b, k_c, k_d, k_idx, k_img2 = jax.random.split(key, 7)

    images = jax.random.normal(k_img, (B, C, H, W), dtype=jnp.float32)

    # ROIs with guaranteed x2 > x1 and y2 > y1, normalized to [0, 1].
    x1 = jax.random.uniform(k_a, (n_rois,), minval=0.0, maxval=0.45)
    x2 = jax.random.uniform(k_b, (n_rois,), minval=0.55, maxval=1.0)
    y1 = jax.random.uniform(k_c, (n_rois,), minval=0.0, maxval=0.45)
    y2 = jax.random.uniform(k_d, (n_rois,), minval=0.55, maxval=1.0)
    rois_np = np.stack(
        [np.asarray(x1), np.asarray(y1), np.asarray(x2), np.asarray(y2)], axis=1
    ).astype(np.float32)
    roi_idx_np = np.asarray(
        jax.random.randint(k_idx, (n_rois,), 0, B), dtype=np.int32)

    # Small-C (NCHW, W-on-lanes) path — the module's test-sized forward.
    out = slow_roi_pool(images, rois_np, roi_idx_np, output_size)
    out = jax.block_until_ready(out)
    ref = _numpy_reference(np.asarray(images), rois_np, roi_idx_np, output_size)
    np.testing.assert_allclose(np.asarray(out), ref, rtol=0.0, atol=0.0)

    # Also exercise the lane-dense (channels-last) path once with C = 128.
    images_ld = jax.random.normal(k_img2, (B, 128, H, W), dtype=jnp.float32)
    out_ld = jax.block_until_ready(
        slow_roi_pool(images_ld, rois_np[:4], roi_idx_np[:4], output_size))
    ref_ld = _numpy_reference(np.asarray(images_ld), rois_np[:4],
                              roi_idx_np[:4], output_size)
    np.testing.assert_allclose(np.asarray(out_ld), ref_ld, rtol=0.0, atol=0.0)

    print("KERNEL_OK")
</pallas_src>

<mosaic_0001>
module attributes {stable_mosaic.version = 11 : i64} {
  func.func @_roi_pool_kernel_nchw(%arg0: i32, %arg1: memref<8xi32, #tpu.memory_space<smem>>, %arg2: memref<8xi32, #tpu.memory_space<smem>>, %arg3: memref<32xi32, #tpu.memory_space<smem>>, %arg4: memref<32xi32, #tpu.memory_space<smem>>, %arg5: memref<32xi32, #tpu.memory_space<smem>>, %arg6: memref<32xi32, #tpu.memory_space<smem>>, %arg7: memref<1x4x16x16xf32, #tpu.memory_space<vmem>>, %arg8: memref<1x4x4x4xf32, #tpu.memory_space<vmem>>) attributes {dimension_semantics = [#tpu.dimension_semantics<parallel>], iteration_bounds = array<i64: 8>, scalar_prefetch = 6 : i64, scratch_operands = 0 : i64, tpu.core_type = #tpu.core_type<tc>, window_params = [{transform_indices = @transform_0, window_bounds = array<i64: 1, 4, 16, 16>}, {transform_indices = @transform_1, window_bounds = array<i64: 1, 4, 4, 4>}]} {
    %c4_i32 = arith.constant 4 : i32
    %0 = arith.muli %arg0, %c4_i32 : i32
    %1 = tpu.iota {dimensions = array<i32: 0>} : vector<5x16xi32>
    %2 = tpu.iota {dimensions = array<i32: 1>} : vector<1x16xi32>
    %c0_i32 = arith.constant 0 : i32
    %3 = arith.addi %0, %c0_i32 : i32
    %4 = arith.index_cast %3 : i32 to index
    %5 = memref.load %arg3[%4] : memref<32xi32, #tpu.memory_space<smem>>
    %c0_i32_0 = arith.constant 0 : i32
    %6 = arith.addi %0, %c0_i32_0 : i32
    %7 = arith.index_cast %6 : i32 to index
    %8 = memref.load %arg4[%7] : memref<32xi32, #tpu.memory_space<smem>>
    %c11_i32 = arith.constant 11 : i32
    %9 = arith.minsi %5, %c11_i32 : i32
    %c0_i32_1 = arith.constant 0 : i32
    %10 = arith.maxsi %9, %c0_i32_1 : i32
    %c0 = arith.constant 0 : index
    %c0_2 = arith.constant 0 : index
    %11 = arith.index_cast %10 : i32 to index
    %c0_3 = arith.constant 0 : index
    %12 = vector.load %arg7[%c0, %c0_2, %11, %c0_3] : memref<1x4x16x16xf32, #tpu.memory_space<vmem>>, vector<1x4x5x16xf32>
    %13 = vector.shape_cast %12 : vector<1x4x5x16xf32> to vector<4x5x16xf32>
    %14 = vector.broadcast %10 : i32 to vector<5x16xi32>
    %15 = arith.addi %1, %14 : vector<5x16xi32>
    %16 = vector.broadcast %5 : i32 to vector<5x16xi32>
    %17 = arith.cmpi sge, %15, %16 : vector<5x16xi32>
    %18 = vector.broadcast %8 : i32 to vector<5x16xi32>
    %19 = arith.cmpi slt, %15, %18 : vector<5x16xi32>
    %20 = arith.andi %17, %19 : vector<5x16xi1>
    %21 = vector.shape_cast %20 : vector<5x16xi1> to vector<1x5x16xi1>
    %cst = arith.constant -3.40282347E+38 : f32
    %22 = vector.shape_cast %21 : vector<1x5x16xi1> to vector<1x5x16xi1>
    %23 = vector.broadcast %22 : vector<1x5x16xi1> to vector<4x5x16xi1>
    %24 = vector.broadcast %cst : f32 to vector<4x5x16xf32>
    %25 = arith.select %23, %13, %24 : vector<4x5x16xi1>, vector<4x5x16xf32>
    %cst_4 = arith.constant dense<0xFF800000> : vector<4x16xf32>
    %26 = vector.multi_reduction <maximumf>, %25, %cst_4 [1] : vector<4x5x16xf32> to vector<4x16xf32>
    %c0_i32_5 = arith.constant 0 : i32
    %27 = arith.addi %0, %c0_i32_5 : i32
    %28 = arith.index_cast %27 : i32 to index
    %29 = memref.load %arg5[%28] : memref<32xi32, #tpu.memory_space<smem>>
    %c0_i32_6 = arith.constant 0 : i32
    %30 = arith.addi %0, %c0_i32_6 : i32
    %31 = arith.index_cast %30 : i32 to index
    %32 = memref.load %arg6[%31] : memref<32xi32, #tpu.memory_space<smem>>
    %33 = vector.broadcast %29 : i32 to vector<1x16xi32>
    %34 = arith.cmpi sge, %2, %33 : vector<1x16xi32>
    %35 = vector.broadcast %32 : i32 to vector<1x16xi32>
    %36 = arith.cmpi slt, %2, %35 : vector<1x16xi32>
    %37 = arith.andi %34, %36 : vector<1x16xi1>
    %cst_7 = arith.constant -3.40282347E+38 : f32
    %38 = vector.shape_cast %37 : vector<1x16xi1> to vector<1x16xi1>
    %39 = vector.broadcast %38 : vector<1x16xi1> to vector<4x16xi1>
    %40 = vector.broadcast %cst_7 : f32 to vector<4x16xf32>
    %41 = arith.select %39, %26, %40 : vector<4x16xi1>, vector<4x16xf32>
    %cst_8 = arith.constant dense<0xFF800000> : vector<4xf32>
    %42 = vector.multi_reduction <maximumf>, %41, %cst_8 [1] : vector<4x16xf32> to vector<4xf32>
    %43 = vector.shape_cast %42 : vector<4xf32> to vector<4x1xf32>
    %c1_i32 = arith.constant 1 : i32
    %44 = arith.addi %0, %c1_i32 : i32
    %45 = arith.index_cast %44 : i32 to index
    %46 = memref.load %arg5[%45] : memref<32xi32, #tpu.memory_space<smem>>
    %c1_i32_9 = arith.constant 1 : i32
    %47 = arith.addi %0, %c1_i32_9 : i32
    %48 = arith.index_cast %47 : i32 to index
    %49 = memref.load %arg6[%48] : memref<32xi32, #tpu.memory_space<smem>>
    %50 = vector.broadcast %46 : i32 to vector<1x16xi32>
    %51 = arith.cmpi sge, %2, %50 : vector<1x16xi32>
    %52 = vector.broadcast %49 : i32 to vector<1x16xi32>
    %53 = arith.cmpi slt, %2, %52 : vector<1x16xi32>
    %54 = arith.andi %51, %53 : vector<1x16xi1>
    %cst_10 = arith.constant -3.40282347E+38 : f32
    %55 = vector.shape_cast %54 : vector<1x16xi1> to vector<1x16xi1>
    %56 = vector.broadcast %55 : vector<1x16xi1> to vector<4x16xi1>
    %57 = vector.broadcast %cst_10 : f32 to vector<4x16xf32>
    %58 = arith.select %56, %26, %57 : vector<4x16xi1>, vector<4x16xf32>
    %cst_11 = arith.constant dense<0xFF800000> : vector<4xf32>
    %59 = vector.multi_reduction <maximumf>, %58, %cst_11 [1] : vector<4x16xf32> to vector<4xf32>
    %60 = vector.shape_cast %59 : vector<4xf32> to vector<4x1xf32>
    %c2_i32 = arith.constant 2 : i32
    %61 = arith.addi %0, %c2_i32 : i32
    %62 = arith.index_cast %61 : i32 to index
    %63 = memref.load %arg5[%62] : memref<32xi32, #tpu.memory_space<smem>>
    %c2_i32_12 = arith.constant 2 : i32
    %64 = arith.addi %0, %c2_i32_12 : i32
    %65 = arith.index_cast %64 : i32 to index
    %66 = memref.load %arg6[%65] : memref<32xi32, #tpu.memory_space<smem>>
    %67 = vector.broadcast %63 : i32 to vector<1x16xi32>
    %68 = arith.cmpi sge, %2, %67 : vector<1x16xi32>
    %69 = vector.broadcast %66 : i32 to vector<1x16xi32>
    %70 = arith.cmpi slt, %2, %69 : vector<1x16xi32>
    %71 = arith.andi %68, %70 : vector<1x16xi1>
    %cst_13 = arith.constant -3.40282347E+38 : f32
    %72 = vector.shape_cast %71 : vector<1x16xi1> to vector<1x16xi1>
    %73 = vector.broadcast %72 : vector<1x16xi1> to vector<4x16xi1>
    %74 = vector.broadcast %cst_13 : f32 to vector<4x16xf32>
    %75 = arith.select %73, %26, %74 : vector<4x16xi1>, vector<4x16xf32>
    %cst_14 = arith.constant dense<0xFF800000> : vector<4xf32>
    %76 = vector.multi_reduction <maximumf>, %75, %cst_14 [1] : vector<4x16xf32> to vector<4xf32>
    %77 = vector.shape_cast %76 : vector<4xf32> to vector<4x1xf32>
    %c3_i32 = arith.constant 3 : i32
    %78 = arith.addi %0, %c3_i32 : i32
    %79 = arith.index_cast %78 : i32 to index
    %80 = memref.load %arg5[%79] : memref<32xi32, #tpu.memory_space<smem>>
    %c3_i32_15 = arith.constant 3 : i32
    %81 = arith.addi %0, %c3_i32_15 : i32
    %82 = arith.index_cast %81 : i32 to index
    %83 = memref.load %arg6[%82] : memref<32xi32, #tpu.memory_space<smem>>
    %84 = vector.broadcast %80 : i32 to vector<1x16xi32>
    %85 = arith.cmpi sge, %2, %84 : vector<1x16xi32>
    %86 = vector.broadcast %83 : i32 to vector<1x16xi32>
    %87 = arith.cmpi slt, %2, %86 : vector<1x16xi32>
    %88 = arith.andi %85, %87 : vector<1x16xi1>
    %cst_16 = arith.constant -3.40282347E+38 : f32
    %89 = vector.shape_cast %88 : vector<1x16xi1> to vector<1x16xi1>
    %90 = vector.broadcast %89 : vector<1x16xi1> to vector<4x16xi1>
    %91 = vector.broadcast %cst_16 : f32 to vector<4x16xf32>
    %92 = arith.select %90, %26, %91 : vector<4x16xi1>, vector<4x16xf32>
    %cst_17 = arith.constant dense<0xFF800000> : vector<4xf32>
    %93 = vector.multi_reduction <maximumf>, %92, %cst_17 [1] : vector<4x16xf32> to vector<4xf32>
    %94 = vector.shape_cast %93 : vector<4xf32> to vector<4x1xf32>
    %95 = tpu.concatenate %43, %60, %77, %94 in 1 : vector<4x1xf32>, vector<4x1xf32>, vector<4x1xf32>, vector<4x1xf32> -> vector<4x4xf32>
    %c1_i32_18 = arith.constant 1 : i32
    %96 = arith.addi %0, %c1_i32_18 : i32
    %97 = arith.index_cast %96 : i32 to index
    %98 = memref.load %arg3[%97] : memref<32xi32, #tpu.memory_space<smem>>
    %c1_i32_19 = arith.constant 1 : i32
    %99 = arith.addi %0, %c1_i32_19 : i32
    %100 = arith.index_cast %99 : i32 to index
    %101 = memref.load %arg4[%100] : memref<32xi32, #tpu.memory_space<smem>>
    %c11_i32_20 = arith.constant 11 : i32
    %102 = arith.minsi %98, %c11_i32_20 : i32
    %c0_i32_21 = arith.constant 0 : i32
    %103 = arith.maxsi %102, %c0_i32_21 : i32
    %c0_22 = arith.constant 0 : index
    %c0_23 = arith.constant 0 : index
    %104 = arith.index_cast %103 : i32 to index
    %c0_24 = arith.constant 0 : index
    %105 = vector.load %arg7[%c0_22, %c0_23, %104, %c0_24] : memref<1x4x16x16xf32, #tpu.memory_space<vmem>>, vector<1x4x5x16xf32>
    %106 = vector.shape_cast %105 : vector<1x4x5x16xf32> to vector<4x5x16xf32>
    %107 = vector.broadcast %103 : i32 to vector<5x16xi32>
    %108 = arith.addi %1, %107 : vector<5x16xi32>
    %109 = vector.broadcast %98 : i32 to vector<5x16xi32>
    %110 = arith.cmpi sge, %108, %109 : vector<5x16xi32>
    %111 = vector.broadcast %101 : i32 to vector<5x16xi32>
    %112 = arith.cmpi slt, %108, %111 : vector<5x16xi32>
    %113 = arith.andi %110, %112 : vector<5x16xi1>
    %114 = vector.shape_cast %113 : vector<5x16xi1> to vector<1x5x16xi1>
    %cst_25 = arith.constant -3.40282347E+38 : f32
    %115 = vector.shape_cast %114 : vector<1x5x16xi1> to vector<1x5x16xi1>
    %116 = vector.broadcast %115 : vector<1x5x16xi1> to vector<4x5x16xi1>
    %117 = vector.broadcast %cst_25 : f32 to vector<4x5x16xf32>
    %118 = arith.select %116, %106, %117 : vector<4x5x16xi1>, vector<4x5x16xf32>
    %cst_26 = arith.constant dense<0xFF800000> : vector<4x16xf32>
    %119 = vector.multi_reduction <maximumf>, %118, %cst_26 [1] : vector<4x5x16xf32> to vector<4x16xf32>
    %c0_i32_27 = arith.constant 0 : i32
    %120 = arith.addi %0, %c0_i32_27 : i32
    %121 = arith.index_cast %120 : i32 to index
    %122 = memref.load %arg5[%121] : memref<32xi32, #tpu.memory_space<smem>>
    %c0_i32_28 = arith.constant 0 : i32
    %123 = arith.addi %0, %c0_i32_28 : i32
    %124 = arith.index_cast %123 : i32 to index
    %125 = memref.load %arg6[%124] : memref<32xi32, #tpu.memory_space<smem>>
    %126 = vector.broadcast %122 : i32 to vector<1x16xi32>
    %127 = arith.cmpi sge, %2, %126 : vector<1x16xi32>
    %128 = vector.broadcast %125 : i32 to vector<1x16xi32>
    %129 = arith.cmpi slt, %2, %128 : vector<1x16xi32>
    %130 = arith.andi %127, %129 : vector<1x16xi1>
    %cst_29 = arith.constant -3.40282347E+38 : f32
    %131 = vector.shape_cast %130 : vector<1x16xi1> to vector<1x16xi1>
    %132 = vector.broadcast %131 : vector<1x16xi1> to vector<4x16xi1>
    %133 = vector.broadcast %cst_29 : f32 to vector<4x16xf32>
    %134 = arith.select %132, %119, %133 : vector<4x16xi1>, vector<4x16xf32>
    %cst_30 = arith.constant dense<0xFF800000> : vector<4xf32>
    %135 = vector.multi_reduction <maximumf>, %134, %cst_30 [1] : vector<4x16xf32> to vector<4xf32>
    %136 = vector.shape_cast %135 : vector<4xf32> to vector<4x1xf32>
    %c1_i32_31 = arith.constant 1 : i32
    %137 = arith.addi %0, %c1_i32_31 : i32
    %138 = arith.index_cast %137 : i32 to index
    %139 = memref.load %arg5[%138] : memref<32xi32, #tpu.memory_space<smem>>
    %c1_i32_32 = arith.constant 1 : i32
    %140 = arith.addi %0, %c1_i32_32 : i32
    %141 = arith.index_cast %140 : i32 to index
    %142 = memref.load %arg6[%141] : memref<32xi32, #tpu.memory_space<smem>>
    %143 = vector.broadcast %139 : i32 to vector<1x16xi32>
    %144 = arith.cmpi sge, %2, %143 : vector<1x16xi32>
    %145 = vector.broadcast %142 : i32 to vector<1x16xi32>
    %146 = arith.cmpi slt, %2, %145 : vector<1x16xi32>
    %147 = arith.andi %144, %146 : vector<1x16xi1>
    %cst_33 = arith.constant -3.40282347E+38 : f32
    %148 = vector.shape_cast %147 : vector<1x16xi1> to vector<1x16xi1>
    %149 = vector.broadcast %148 : vector<1x16xi1> to vector<4x16xi1>
    %150 = vector.broadcast %cst_33 : f32 to vector<4x16xf32>
    %151 = arith.select %149, %119, %150 : vector<4x16xi1>, vector<4x16xf32>
    %cst_34 = arith.constant dense<0xFF800000> : vector<4xf32>
    %152 = vector.multi_reduction <maximumf>, %151, %cst_34 [1] : vector<4x16xf32> to vector<4xf32>
    %153 = vector.shape_cast %152 : vector<4xf32> to vector<4x1xf32>
    %c2_i32_35 = arith.constant 2 : i32
    %154 = arith.addi %0, %c2_i32_35 : i32
    %155 = arith.index_cast %154 : i32 to index
    %156 = memref.load %arg5[%155] : memref<32xi32, #tpu.memory_space<smem>>
    %c2_i32_36 = arith.constant 2 : i32
    %157 = arith.addi %0, %c2_i32_36 : i32
    %158 = arith.index_cast %157 : i32 to index
    %159 = memref.load %arg6[%158] : memref<32xi32, #tpu.memory_space<smem>>
    %160 = vector.broadcast %156 : i32 to vector<1x16xi32>
    %161 = arith.cmpi sge, %2, %160 : vector<1x16xi32>
    %162 = vector.broadcast %159 : i32 to vector<1x16xi32>
    %163 = arith.cmpi slt, %2, %162 : vector<1x16xi32>
    %164 = arith.andi %161, %163 : vector<1x16xi1>
    %cst_37 = arith.constant -3.40282347E+38 : f32
    %165 = vector.shape_cast %164 : vector<1x16xi1> to vector<1x16xi1>
    %166 = vector.broadcast %165 : vector<1x16xi1> to vector<4x16xi1>
    %167 = vector.broadcast %cst_37 : f32 to vector<4x16xf32>
    %168 = arith.select %166, %119, %167 : vector<4x16xi1>, vector<4x16xf32>
    %cst_38 = arith.constant dense<0xFF800000> : vector<4xf32>
    %169 = vector.multi_reduction <maximumf>, %168, %cst_38 [1] : vector<4x16xf32> to vector<4xf32>
    %170 = vector.shape_cast %169 : vector<4xf32> to vector<4x1xf32>
    %c3_i32_39 = arith.constant 3 : i32
    %171 = arith.addi %0, %c3_i32_39 : i32
    %172 = arith.index_cast %171 : i32 to index
    %173 = memref.load %arg5[%172] : memref<32xi32, #tpu.memory_space<smem>>
    %c3_i32_40 = arith.constant 3 : i32
    %174 = arith.addi %0, %c3_i32_40 : i32
    %175 = arith.index_cast %174 : i32 to index
    %176 = memref.load %arg6[%175] : memref<32xi32, #tpu.memory_space<smem>>
    %177 = vector.broadcast %173 : i32 to vector<1x16xi32>
    %178 = arith.cmpi sge, %2, %177 : vector<1x16xi32>
    %179 = vector.broadcast %176 : i32 to vector<1x16xi32>
    %180 = arith.cmpi slt, %2, %179 : vector<1x16xi32>
    %181 = arith.andi %178, %180 : vector<1x16xi1>
    %cst_41 = arith.constant -3.40282347E+38 : f32
    %182 = vector.shape_cast %181 : vector<1x16xi1> to vector<1x16xi1>
    %183 = vector.broadcast %182 : vector<1x16xi1> to vector<4x16xi1>
    %184 = vector.broadcast %cst_41 : f32 to vector<4x16xf32>
    %185 = arith.select %183, %119, %184 : vector<4x16xi1>, vector<4x16xf32>
    %cst_42 = arith.constant dense<0xFF800000> : vector<4xf32>
    %186 = vector.multi_reduction <maximumf>, %185, %cst_42 [1] : vector<4x16xf32> to vector<4xf32>
    %187 = vector.shape_cast %186 : vector<4xf32> to vector<4x1xf32>
    %188 = tpu.concatenate %136, %153, %170, %187 in 1 : vector<4x1xf32>, vector<4x1xf32>, vector<4x1xf32>, vector<4x1xf32> -> vector<4x4xf32>
    %c2_i32_43 = arith.constant 2 : i32
    %189 = arith.addi %0, %c2_i32_43 : i32
    %190 = arith.index_cast %189 : i32 to index
    %191 = memref.load %arg3[%190] : memref<32xi32, #tpu.memory_space<smem>>
    %c2_i32_44 = arith.constant 2 : i32
    %192 = arith.addi %0, %c2_i32_44 : i32
    %193 = arith.index_cast %192 : i32 to index
    %194 = memref.load %arg4[%193] : memref<32xi32, #tpu.memory_space<smem>>
    %c11_i32_45 = arith.constant 11 : i32
    %195 = arith.minsi %191, %c11_i32_45 : i32
    %c0_i32_46 = arith.constant 0 : i32
    %196 = arith.maxsi %195, %c0_i32_46 : i32
    %c0_47 = arith.constant 0 : index
    %c0_48 = arith.constant 0 : index
    %197 = arith.index_cast %196 : i32 to index
    %c0_49 = arith.constant 0 : index
    %198 = vector.load %arg7[%c0_47, %c0_48, %197, %c0_49] : memref<1x4x16x16xf32, #tpu.memory_space<vmem>>, vector<1x4x5x16xf32>
    %199 = vector.shape_cast %198 : vector<1x4x5x16xf32> to vector<4x5x16xf32>
    %200 = vector.broadcast %196 : i32 to vector<5x16xi32>
    %201 = arith.addi %1, %200 : vector<5x16xi32>
    %202 = vector.broadcast %191 : i32 to vector<5x16xi32>
    %203 = arith.cmpi sge, %201, %202 : vector<5x16xi32>
    %204 = vector.broadcast %194 : i32 to vector<5x16xi32>
    %205 = arith.cmpi slt, %201, %204 : vector<5x16xi32>
    %206 = arith.andi %203, %205 : vector<5x16xi1>
    %207 = vector.shape_cast %206 : vector<5x16xi1> to vector<1x5x16xi1>
    %cst_50 = arith.constant -3.40282347E+38 : f32
    %208 = vector.shape_cast %207 : vector<1x5x16xi1> to vector<1x5x16xi1>
    %209 = vector.broadcast %208 : vector<1x5x16xi1> to vector<4x5x16xi1>
    %210 = vector.broadcast %cst_50 : f32 to vector<4x5x16xf32>
    %211 = arith.select %209, %199, %210 : vector<4x5x16xi1>, vector<4x5x16xf32>
    %cst_51 = arith.constant dense<0xFF800000> : vector<4x16xf32>
    %212 = vector.multi_reduction <maximumf>, %211, %cst_51 [1] : vector<4x5x16xf32> to vector<4x16xf32>
    %c0_i32_52 = arith.constant 0 : i32
    %213 = arith.addi %0, %c0_i32_52 : i32
    %214 = arith.index_cast %213 : i32 to index
    %215 = memref.load %arg5[%214] : memref<32xi32, #tpu.memory_space<smem>>
    %c0_i32_53 = arith.constant 0 : i32
    %216 = arith.addi %0, %c0_i32_53 : i32
    %217 = arith.index_cast %216 : i32 to index
    %218 = memref.load %arg6[%217] : memref<32xi32, #tpu.memory_space<smem>>
    %219 = vector.broadcast %215 : i32 to vector<1x16xi32>
    %220 = arith.cmpi sge, %2, %219 : vector<1x16xi32>
    %221 = vector.broadcast %218 : i32 to vector<1x16xi32>
    %222 = arith.cmpi slt, %2, %221 : vector<1x16xi32>
    %223 = arith.andi %220, %222 : vector<1x16xi1>
    %cst_54 = arith.constant -3.40282347E+38 : f32
    %224 = vector.shape_cast %223 : vector<1x16xi1> to vector<1x16xi1>
    %225 = vector.broadcast %224 : vector<1x16xi1> to vector<4x16xi1>
    %226 = vector.broadcast %cst_54 : f32 to vector<4x16xf32>
    %227 = arith.select %225, %212, %226 : vector<4x16xi1>, vector<4x16xf32>
    %cst_55 = arith.constant dense<0xFF800000> : vector<4xf32>
    %228 = vector.multi_reduction <maximumf>, %227, %cst_55 [1] : vector<4x16xf32> to vector<4xf32>
    %229 = vector.shape_cast %228 : vector<4xf32> to vector<4x1xf32>
    %c1_i32_56 = arith.constant 1 : i32
    %230 = arith.addi %0, %c1_i32_56 : i32
    %231 = arith.index_cast %230 : i32 to index
    %232 = memref.load %arg5[%231] : memref<32xi32, #tpu.memory_space<smem>>
    %c1_i32_57 = arith.constant 1 : i32
    %233 = arith.addi %0, %c1_i32_57 : i32
    %234 = arith.index_cast %233 : i32 to index
    %235 = memref.load %arg6[%234] : memref<32xi32, #tpu.memory_space<smem>>
    %236 = vector.broadcast %232 : i32 to vector<1x16xi32>
    %237 = arith.cmpi sge, %2, %236 : vector<1x16xi32>
    %238 = vector.broadcast %235 : i32 to vector<1x16xi32>
    %239 = arith.cmpi slt, %2, %238 : vector<1x16xi32>
    %240 = arith.andi %237, %239 : vector<1x16xi1>
    %cst_58 = arith.constant -3.40282347E+38 : f32
    %241 = vector.shape_cast %240 : vector<1x16xi1> to vector<1x16xi1>
    %242 = vector.broadcast %241 : vector<1x16xi1> to vector<4x16xi1>
    %243 = vector.broadcast %cst_58 : f32 to vector<4x16xf32>
    %244 = arith.select %242, %212, %243 : vector<4x16xi1>, vector<4x16xf32>
    %cst_59 = arith.constant dense<0xFF800000> : vector<4xf32>
    %245 = vector.multi_reduction <maximumf>, %244, %cst_59 [1] : vector<4x16xf32> to vector<4xf32>
    %246 = vector.shape_cast %245 : vector<4xf32> to vector<4x1xf32>
    %c2_i32_60 = arith.constant 2 : i32
    %247 = arith.addi %0, %c2_i32_60 : i32
    %248 = arith.index_cast %247 : i32 to index
    %249 = memref.load %arg5[%248] : memref<32xi32, #tpu.memory_space<smem>>
    %c2_i32_61 = arith.constant 2 : i32
    %250 = arith.addi %0, %c2_i32_61 : i32
    %251 = arith.index_cast %250 : i32 to index
    %252 = memref.load %arg6[%251] : memref<32xi32, #tpu.memory_space<smem>>
    %253 = vector.broadcast %249 : i32 to vector<1x16xi32>
    %254 = arith.cmpi sge, %2, %253 : vector<1x16xi32>
    %255 = vector.broadcast %252 : i32 to vector<1x16xi32>
    %256 = arith.cmpi slt, %2, %255 : vector<1x16xi32>
    %257 = arith.andi %254, %256 : vector<1x16xi1>
    %cst_62 = arith.constant -3.40282347E+38 : f32
    %258 = vector.shape_cast %257 : vector<1x16xi1> to vector<1x16xi1>
    %259 = vector.broadcast %258 : vector<1x16xi1> to vector<4x16xi1>
    %260 = vector.broadcast %cst_62 : f32 to vector<4x16xf32>
    %261 = arith.select %259, %212, %260 : vector<4x16xi1>, vector<4x16xf32>
    %cst_63 = arith.constant dense<0xFF800000> : vector<4xf32>
    %262 = vector.multi_reduction <maximumf>, %261, %cst_63 [1] : vector<4x16xf32> to vector<4xf32>
    %263 = vector.shape_cast %262 : vector<4xf32> to vector<4x1xf32>
    %c3_i32_64 = arith.constant 3 : i32
    %264 = arith.addi %0, %c3_i32_64 : i32
    %265 = arith.index_cast %264 : i32 to index
    %266 = memref.load %arg5[%265] : memref<32xi32, #tpu.memory_space<smem>>
    %c3_i32_65 = arith.constant 3 : i32
    %267 = arith.addi %0, %c3_i32_65 : i32
    %268 = arith.index_cast %267 : i32 to index
    %269 = memref.load %arg6[%268] : memref<32xi32, #tpu.memory_space<smem>>
    %270 = vector.broadcast %266 : i32 to vector<1x16xi32>
    %271 = arith.cmpi sge, %2, %270 : vector<1x16xi32>
    %272 = vector.broadcast %269 : i32 to vector<1x16xi32>
    %273 = arith.cmpi slt, %2, %272 : vector<1x16xi32>
    %274 = arith.andi %271, %273 : vector<1x16xi1>
    %cst_66 = arith.constant -3.40282347E+38 : f32
    %275 = vector.shape_cast %274 : vector<1x16xi1> to vector<1x16xi1>
    %276 = vector.broadcast %275 : vector<1x16xi1> to vector<4x16xi1>
    %277 = vector.broadcast %cst_66 : f32 to vector<4x16xf32>
    %278 = arith.select %276, %212, %277 : vector<4x16xi1>, vector<4x16xf32>
    %cst_67 = arith.constant dense<0xFF800000> : vector<4xf32>
    %279 = vector.multi_reduction <maximumf>, %278, %cst_67 [1] : vector<4x16xf32> to vector<4xf32>
    %280 = vector.shape_cast %279 : vector<4xf32> to vector<4x1xf32>
    %281 = tpu.concatenate %229, %246, %263, %280 in 1 : vector<4x1xf32>, vector<4x1xf32>, vector<4x1xf32>, vector<4x1xf32> -> vector<4x4xf32>
    %c3_i32_68 = arith.constant 3 : i32
    %282 = arith.addi %0, %c3_i32_68 : i32
    %283 = arith.index_cast %282 : i32 to index
    %284 = memref.load %arg3[%283] : memref<32xi32, #tpu.memory_space<smem>>
    %c3_i32_69 = arith.constant 3 : i32
    %285 = arith.addi %0, %c3_i32_69 : i32
    %286 = arith.index_cast %285 : i32 to index
    %287 = memref.load %arg4[%286] : memref<32xi32, #tpu.memory_space<smem>>
    %c11_i32_70 = arith.constant 11 : i32
    %288 = arith.minsi %284, %c11_i32_70 : i32
    %c0_i32_71 = arith.constant 0 : i32
    %289 = arith.maxsi %288, %c0_i32_71 : i32
    %c0_72 = arith.constant 0 : index
    %c0_73 = arith.constant 0 : index
    %290 = arith.index_cast %289 : i32 to index
    %c0_74 = arith.constant 0 : index
    %291 = vector.load %arg7[%c0_72, %c0_73, %290, %c0_74] : memref<1x4x16x16xf32, #tpu.memory_space<vmem>>, vector<1x4x5x16xf32>
    %292 = vector.shape_cast %291 : vector<1x4x5x16xf32> to vector<4x5x16xf32>
    %293 = vector.broadcast %289 : i32 to vector<5x16xi32>
    %294 = arith.addi %1, %293 : vector<5x16xi32>
    %295 = vector.broadcast %284 : i32 to vector<5x16xi32>
    %296 = arith.cmpi sge, %294, %295 : vector<5x16xi32>
    %297 = vector.broadcast %287 : i32 to vector<5x16xi32>
    %298 = arith.cmpi slt, %294, %297 : vector<5x16xi32>
    %299 = arith.andi %296, %298 : vector<5x16xi1>
    %300 = vector.shape_cast %299 : vector<5x16xi1> to vector<1x5x16xi1>
    %cst_75 = arith.constant -3.40282347E+38 : f32
    %301 = vector.shape_cast %300 : vector<1x5x16xi1> to vector<1x5x16xi1>
    %302 = vector.broadcast %301 : vector<1x5x16xi1> to vector<4x5x16xi1>
    %303 = vector.broadcast %cst_75 : f32 to vector<4x5x16xf32>
    %304 = arith.select %302, %292, %303 : vector<4x5x16xi1>, vector<4x5x16xf32>
    %cst_76 = arith.constant dense<0xFF800000> : vector<4x16xf32>
    %305 = vector.multi_reduction <maximumf>, %304, %cst_76 [1] : vector<4x5x16xf32> to vector<4x16xf32>
    %c0_i32_77 = arith.constant 0 : i32
    %306 = arith.addi %0, %c0_i32_77 : i32
    %307 = arith.index_cast %306 : i32 to index
    %308 = memref.load %arg5[%307] : memref<32xi32, #tpu.memory_space<smem>>
    %c0_i32_78 = arith.constant 0 : i32
    %309 = arith.addi %0, %c0_i32_78 : i32
    %310 = arith.index_cast %309 : i32 to index
    %311 = memref.load %arg6[%310] : memref<32xi32, #tpu.memory_space<smem>>
    %312 = vector.broadcast %308 : i32 to vector<1x16xi32>
    %313 = arith.cmpi sge, %2, %312 : vector<1x16xi32>
    %314 = vector.broadcast %311 : i32 to vector<1x16xi32>
    %315 = arith.cmpi slt, %2, %314 : vector<1x16xi32>
    %316 = arith.andi %313, %315 : vector<1x16xi1>
    %cst_79 = arith.constant -3.40282347E+38 : f32
    %317 = vector.shape_cast %316 : vector<1x16xi1> to vector<1x16xi1>
    %318 = vector.broadcast %317 : vector<1x16xi1> to vector<4x16xi1>
    %319 = vector.broadcast %cst_79 : f32 to vector<4x16xf32>
    %320 = arith.select %318, %305, %319 : vector<4x16xi1>, vector<4x16xf32>
    %cst_80 = arith.constant dense<0xFF800000> : vector<4xf32>
    %321 = vector.multi_reduction <maximumf>, %320, %cst_80 [1] : vector<4x16xf32> to vector<4xf32>
    %322 = vector.shape_cast %321 : vector<4xf32> to vector<4x1xf32>
    %c1_i32_81 = arith.constant 1 : i32
    %323 = arith.addi %0, %c1_i32_81 : i32
    %324 = arith.index_cast %323 : i32 to index
    %325 = memref.load %arg5[%324] : memref<32xi32, #tpu.memory_space<smem>>
    %c1_i32_82 = arith.constant 1 : i32
    %326 = arith.addi %0, %c1_i32_82 : i32
    %327 = arith.index_cast %326 : i32 to index
    %328 = memref.load %arg6[%327] : memref<32xi32, #tpu.memory_space<smem>>
    %329 = vector.broadcast %325 : i32 to vector<1x16xi32>
    %330 = arith.cmpi sge, %2, %329 : vector<1x16xi32>
    %331 = vector.broadcast %328 : i32 to vector<1x16xi32>
    %332 = arith.cmpi slt, %2, %331 : vector<1x16xi32>
    %333 = arith.andi %330, %332 : vector<1x16xi1>
    %cst_83 = arith.constant -3.40282347E+38 : f32
    %334 = vector.shape_cast %333 : vector<1x16xi1> to vector<1x16xi1>
    %335 = vector.broadcast %334 : vector<1x16xi1> to vector<4x16xi1>
    %336 = vector.broadcast %cst_83 : f32 to vector<4x16xf32>
    %337 = arith.select %335, %305, %336 : vector<4x16xi1>, vector<4x16xf32>
    %cst_84 = arith.constant dense<0xFF800000> : vector<4xf32>
    %338 = vector.multi_reduction <maximumf>, %337, %cst_84 [1] : vector<4x16xf32> to vector<4xf32>
    %339 = vector.shape_cast %338 : vector<4xf32> to vector<4x1xf32>
    %c2_i32_85 = arith.constant 2 : i32
    %340 = arith.addi %0, %c2_i32_85 : i32
    %341 = arith.index_cast %340 : i32 to index
    %342 = memref.load %arg5[%341] : memref<32xi32, #tpu.memory_space<smem>>
    %c2_i32_86 = arith.constant 2 : i32
    %343 = arith.addi %0, %c2_i32_86 : i32
    %344 = arith.index_cast %343 : i32 to index
    %345 = memref.load %arg6[%344] : memref<32xi32, #tpu.memory_space<smem>>
    %346 = vector.broadcast %342 : i32 to vector<1x16xi32>
    %347 = arith.cmpi sge, %2, %346 : vector<1x16xi32>
    %348 = vector.broadcast %345 : i32 to vector<1x16xi32>
    %349 = arith.cmpi slt, %2, %348 : vector<1x16xi32>
    %350 = arith.andi %347, %349 : vector<1x16xi1>
    %cst_87 = arith.constant -3.40282347E+38 : f32
    %351 = vector.shape_cast %350 : vector<1x16xi1> to vector<1x16xi1>
    %352 = vector.broadcast %351 : vector<1x16xi1> to vector<4x16xi1>
    %353 = vector.broadcast %cst_87 : f32 to vector<4x16xf32>
    %354 = arith.select %352, %305, %353 : vector<4x16xi1>, vector<4x16xf32>
    %cst_88 = arith.constant dense<0xFF800000> : vector<4xf32>
    %355 = vector.multi_reduction <maximumf>, %354, %cst_88 [1] : vector<4x16xf32> to vector<4xf32>
    %356 = vector.shape_cast %355 : vector<4xf32> to vector<4x1xf32>
    %c3_i32_89 = arith.constant 3 : i32
    %357 = arith.addi %0, %c3_i32_89 : i32
    %358 = arith.index_cast %357 : i32 to index
    %359 = memref.load %arg5[%358] : memref<32xi32, #tpu.memory_space<smem>>
    %c3_i32_90 = arith.constant 3 : i32
    %360 = arith.addi %0, %c3_i32_90 : i32
    %361 = arith.index_cast %360 : i32 to index
    %362 = memref.load %arg6[%361] : memref<32xi32, #tpu.memory_space<smem>>
    %363 = vector.broadcast %359 : i32 to vector<1x16xi32>
    %364 = arith.cmpi sge, %2, %363 : vector<1x16xi32>
    %365 = vector.broadcast %362 : i32 to vector<1x16xi32>
    %366 = arith.cmpi slt, %2, %365 : vector<1x16xi32>
    %367 = arith.andi %364, %366 : vector<1x16xi1>
    %cst_91 = arith.constant -3.40282347E+38 : f32
    %368 = vector.shape_cast %367 : vector<1x16xi1> to vector<1x16xi1>
    %369 = vector.broadcast %368 : vector<1x16xi1> to vector<4x16xi1>
    %370 = vector.broadcast %cst_91 : f32 to vector<4x16xf32>
    %371 = arith.select %369, %305, %370 : vector<4x16xi1>, vector<4x16xf32>
    %cst_92 = arith.constant dense<0xFF800000> : vector<4xf32>
    %372 = vector.multi_reduction <maximumf>, %371, %cst_92 [1] : vector<4x16xf32> to vector<4xf32>
    %373 = vector.shape_cast %372 : vector<4xf32> to vector<4x1xf32>
    %374 = tpu.concatenate %322, %339, %356, %373 in 1 : vector<4x1xf32>, vector<4x1xf32>, vector<4x1xf32>, vector<4x1xf32> -> vector<4x4xf32>
    %375 = vector.shape_cast %95 : vector<4x4xf32> to vector<4x1x4xf32>
    %376 = vector.shape_cast %188 : vector<4x4xf32> to vector<4x1x4xf32>
    %377 = vector.shape_cast %281 : vector<4x4xf32> to vector<4x1x4xf32>
    %378 = vector.shape_cast %374 : vector<4x4xf32> to vector<4x1x4xf32>
    %379 = tpu.concatenate %375, %376, %377, %378 in 1 : vector<4x1x4xf32>, vector<4x1x4xf32>, vector<4x1x4xf32>, vector<4x1x4xf32> -> vector<4x4x4xf32>
    %c0_93 = arith.constant 0 : index
    %c0_94 = arith.constant 0 : index
    %c0_95 = arith.constant 0 : index
    %c0_96 = arith.constant 0 : index
    %380 = vector.load %arg8[%c0_93, %c0_94, %c0_95, %c0_96] : memref<1x4x4x4xf32, #tpu.memory_space<vmem>>, vector<1x4x4x4xf32>
    %381 = vector.shape_cast %380 : vector<1x4x4x4xf32> to vector<4x4x4xf32>
    %382 = vector.shape_cast %379 : vector<4x4x4xf32> to vector<1x4x4x4xf32>
    tpu.vector_store %arg8[%c0_93, %c0_94, %c0_95, %c0_96], %382 {strides = array<i32>} : memref<1x4x4x4xf32, #tpu.memory_space<vmem>>, vector<1x4x4x4xf32>,
    return
  }
  func.func @transform_0(%arg0: i32, %arg1: memref<8xi32, #tpu.memory_space<smem>>, %arg2: memref<8xi32, #tpu.memory_space<smem>>, %arg3: memref<32xi32, #tpu.memory_space<smem>>, %arg4: memref<32xi32, #tpu.memory_space<smem>>, %arg5: memref<32xi32, #tpu.memory_space<smem>>, %arg6: memref<32xi32, #tpu.memory_space<smem>>) -> (i32, i32, i32, i32) {
    %0 = arith.index_cast %arg0 : i32 to index
    %1 = memref.load %arg1[%0] : memref<8xi32, #tpu.memory_space<smem>>
    %c0_i32 = arith.constant 0 : i32
    %c0_i32_0 = arith.constant 0 : i32
    %c0_i32_1 = arith.constant 0 : i32
    %c0_i32_2 = arith.constant 0 : i32
    return %1, %c0_i32, %c0_i32_0, %c0_i32_1 : i32, i32, i32, i32
  }
  func.func @transform_1(%arg0: i32, %arg1: memref<8xi32, #tpu.memory_space<smem>>, %arg2: memref<8xi32, #tpu.memory_space<smem>>, %arg3: memref<32xi32, #tpu.memory_space<smem>>, %arg4: memref<32xi32, #tpu.memory_space<smem>>, %arg5: memref<32xi32, #tpu.memory_space<smem>>, %arg6: memref<32xi32, #tpu.memory_space<smem>>) -> (i32, i32, i32, i32) {
    %0 = arith.index_cast %arg0 : i32 to index
    %1 = memref.load %arg2[%0] : memref<8xi32, #tpu.memory_space<smem>>
    %c0_i32 = arith.constant 0 : i32
    %c0_i32_0 = arith.constant 0 : i32
    %c0_i32_1 = arith.constant 0 : i32
    %c0_i32_2 = arith.constant 0 : i32
    return %1, %c0_i32, %c0_i32_0, %c0_i32_1 : i32, i32, i32, i32
  }
}

</mosaic_0001>

<bundles_post_ra>
// kernel: tpu_custom_call.1
= control target key start
LH: loop header
LB: loop body
LE: loop exit
PB: predicated region body
PF: predicated region fallthrough
CT: control target
= control target key end

     0   :  { %s1582_s0 = inlined_call_operand.hbm [shape: s32[8], index: 0, kind: input, shape index: {}]   ;;  %s1583_s6 = inlined_call_operand.hbm [shape: f32[2,4,16,16], index: 6, kind: input, shape index: {}]   ;;  %s1584_s7 = inlined_call_operand.vmem [shape: f32[8,4,4,4], index: 7, kind: output, shape index: {}]   ;;  %s1585_s1 = inlined_call_operand.vmem [shape: s32[8], index: 1, kind: input, shape index: {}]   ;;  %s1586_s2 = inlined_call_operand.vmem [shape: s32[32], index: 2, kind: input, shape index: {}]   ;;  %s1587_s3 = inlined_call_operand.vmem [shape: s32[32], index: 3, kind: input, shape index: {}]   ;;  %s1588_s4 = inlined_call_operand.vmem [shape: s32[32], index: 4, kind: input, shape index: {}]   ;;  %s1589_s5 = inlined_call_operand.vmem [shape: s32[32], index: 5, kind: input, shape index: {}]  }
   0x1   :  { %s897_s26 = scalar_lea.hbm %s1582_s0, 16 }
   0x2   :  { %p898_p0 = scmp.ne.s32.totalorder %s1582_s0, %s897_s26  ;;  %p901_p1 = scmp.lt.u32.totalorder %s897_s26, %s1582_s0 }
   0x4   :  { %p903_p2 = pnand %p901_p1, %p898_p0 }
   0x6   :  { %906 = shalt.err (!%p903_p2)  }
   0x7   :  { %s1035_s8 = smov [#allocation3]   ;;  %s14_s13 = sshll.u32 %s1585_s1, 4  ;;  %s15_s13 = int_to_ptr.vmem [resolvable:$true] %s14_s13 }
   0x8   :  { %13 = dma.hbm_to_smem %s1582_s0, 16, %s1035_s8, [#allocation2] }
   0x9   :  { %s18_s16 = sshll.u32 %s1586_s2, 4  ;;  %s907_s17 = scalar_lea.vmem %s15_s13, 16  ;;  %s19_s16 = int_to_ptr.vmem [resolvable:$true] %s18_s16 }
   0xa   :  { %p908_p3 = scmp.ne.s32.totalorder %s15_s13, %s907_s17  ;;  %p912_p4 = scmp.lt.s32.totalorder %s15_s13, %s15_s13 }
   0xb   :  { %p913_p5 = scmp.lt.s32.totalorder %s907_s17, %s907_s17 }
   0xd   :  { %p914_p6 = por %p913_p5, %p912_p4 }
   0xf   :  { %p915_p7 = pnand %p914_p6, %p908_p3 }
  0x11   :  { %918 = shalt.err (!%p915_p7)  }
  0x12   :  { %s1036_s18 = smov [#allocation4]   ;;  %s22_s20 = sshll.u32 %s1587_s3, 4  ;;  %s23_s20 = int_to_ptr.vmem [resolvable:$true] %s22_s20 }
  0x13   :  { %17 = dma.vmem_to_smem %s15_s13, 16, %s1036_s18, [#allocation2] }
  0x14   :  { %s919_s1 = scalar_lea.vmem %s19_s16, 16  ;;  %p924_p9 = scmp.lt.s32.totalorder %s19_s16, %s19_s16 }
  0x15   :  { %p920_p8 = scmp.ne.s32.totalorder %s19_s16, %s919_s1  ;;  %p925_p10 = scmp.lt.s32.totalorder %s919_s1, %s919_s1 }
  0x17   :  { %p926_p11 = por %p925_p10, %p924_p9 }
  0x19   :  { %p927_p12 = pnand %p926_p11, %p920_p8 }
  0x1b   :  { %930 = shalt.err (!%p927_p12)  }
  0x1c   :  { %s1037_s2 = smov [#allocation5]   ;;  %s931_s21 = scalar_lea.vmem %s23_s20, 16 }
  0x1d   :  { %21 = dma.vmem_to_smem %s19_s16, 16, %s1037_s2, [#allocation2] }
  0x1e   :  { %p932_p13 = scmp.ne.s32.totalorder %s23_s20, %s931_s21  ;;  %p936_p0 = scmp.lt.s32.totalorder %s23_s20, %s23_s20 }
  0x1f   :  { %p937_p1 = scmp.lt.s32.totalorder %s931_s21, %s931_s21 }
  0x21   :  { %p938_p2 = por %p937_p1, %p936_p0 }
  0x23   :  { %p939_p3 = pnand %p938_p2, %p932_p13 }
  0x25   :  { %942 = shalt.err (!%p939_p3)  }
  0x26   :  { %s1038_s22 = smov [#allocation6]   ;;  %s26_s24 = sshll.u32 %s1588_s4, 4  ;;  %s27_s24 = int_to_ptr.vmem [resolvable:$true] %s26_s24 }
  0x27   :  { %25 = dma.vmem_to_smem %s23_s20, 16, %s1038_s22, [#allocation2] }
  0x28   :  { %s30_s27 = sshll.u32 %s1589_s5, 4  ;;  %s943_s28 = scalar_lea.vmem %s27_s24, 16  ;;  %s31_s27 = int_to_ptr.vmem [resolvable:$true] %s30_s27 }
  0x29   :  { %p944_p4 = scmp.ne.s32.totalorder %s27_s24, %s943_s28  ;;  %p948_p5 = scmp.lt.s32.totalorder %s27_s24, %s27_s24 }
  0x2a   :  { %p949_p6 = scmp.lt.s32.totalorder %s943_s28, %s943_s28 }
  0x2c   :  { %p950_p7 = por %p949_p6, %p948_p5 }
  0x2e   :  { %p951_p8 = pnand %p950_p7, %p944_p4 }
  0x30   :  { %954 = shalt.err (!%p951_p8)  }
  0x31   :  { %s1039_s29 = smov [#allocation7]   ;;  %s955_s30 = scalar_lea.vmem %s31_s27, 16 }
  0x32   :  { %29 = dma.vmem_to_smem %s27_s24, 16, %s1039_s29, [#allocation2] }
  0x33   :  { %p956_p9 = scmp.ne.s32.totalorder %s31_s27, %s955_s30  ;;  %p960_p10 = scmp.lt.s32.totalorder %s31_s27, %s31_s27 }
  0x34   :  { %p961_p11 = scmp.lt.s32.totalorder %s955_s30, %s955_s30 }
  0x36   :  { %p962_p12 = por %p961_p11, %p960_p10 }
  0x38   :  { %p963_p13 = pnand %p962_p12, %p956_p9 }
  0x3a   :  { %966 = shalt.err (!%p963_p13)  }
  0x3b   :  { %s1040_s4 = smov [#allocation8]  }
  0x3c   :  { %33 = dma.vmem_to_smem %s31_s27, 16, %s1040_s4, [#allocation2] }
  0x3d   :  { %1013 = dma.done.wait [#allocation2], 96 }
  0x3e   :  { %1014 = vsyncadd [#allocation2], 4294967200 }
  0x3f   :  { %35 = sfence }
  0x40   :  { %36 = vsyncpa [#allocation10], 0 }
  0x41   :  { %38 = vsyncpa [#allocation10 + $0x1], 0  ;;  %s1112_s5 = smov 0   ;;  %s1114_s8 = smov 0  }
  0x42   :  { %s1116_s9 = smov 0   ;;  %s1118_s10 = smov 0  }
  0x43 LB: > { %s1128_s11 = sadd.s32 4294967295, %s1033_s10   ;;  %s1130_s12 = sadd.s32 1, %s1033_s10   ;;  %s1033_s10 = sphi %s1118_s10, %s1632_s10   ;;  %s1029_s9 = sphi %s1116_s9, %s1631_s9   ;;  %s1025_s8 = sphi %s1114_s8, %s1630_s8   ;;  %s1021_s5 = sphi %s1112_s5, %s1629_s5  }
  0x44   : > { %s48_s13 = sld [smem:[#allocation3 + %s1033_s10]]  ;;  %p60_p0 = scmp.ne.s32.totalorder %s1029_s9, %s1025_s8 }
  0x45   : > { %s49_s14 = sld [smem:[#allocation3 + %s1130_s12]]  ;;  %p61_p1 = scmp.eq.s32.totalorder %s1033_s10, 0 }
  0x46   : > { %p66_p2 = scmp.ne.s32.totalorder %s1025_s8, %s1021_s5  ;;  %p67_p3 = scmp.eq.s32.totalorder %s1128_s11, 0 }
  0x47   : > { %s53_s15 = sadd.s32 1, %s1029_s9  ;;  %p62_p4 = por %p61_p1, %p60_p0 }
  0x48   : > { %p1138_p5 = por %p67_p3, %p66_p2  ;;  %s118_s17 = sand.u32 1, %s1029_s9  }
  0x49   : > { %p855_p6 = scmp.lt.s32.totalorder %s1033_s10, 8  ;;  %s805_s0 = sshll.u32 %s118_s17, 6 }
  0x4a   : > { %s1591_s16 = scalar_select %p1138_p5, 1, 0 }
  0x4b   : > { %s50_s18 = ssub.s32 %s48_s13, %s49_s14  ;;  %p1143_p8 = pnand %p855_p6, %p62_p4 }
  0x4c   : > { %p51_p7 = scmp.eq.s32.totalorder %s50_s18, 0  ;;  %s122_s22 = scalar_lea.vmem [#allocation9], %s805_s0 }
  0x4d   : > { %s845_s1 = scalar_select %p62_p4, [#allocation3], [#allocation11] }
  0x4e   : > { %s1148_s20 = scalar_select %p51_p7, %s1029_s9, %s53_s15  }
  0x4f   : > { %s846_s2 = scalar_select %p62_p4, %s1033_s10, 0 }
  0x50   : > { %s1634_s1 = smov (!%p855_p6, %s845_s1), [#allocation12]  ;;  %s130_s3 = sshll.u32 %s122_s22, 4  ;;  %s1150_s3 = int_to_ptr.vmem [resolvable:$true] %s130_s3 }
  0x51   : > { %s1636_s2 = smov (!%p855_p6, %s846_s2), 0  ;;  %p808_p9 = scmp.ge.s32.totalorder %s1033_s10, 1 }
  0x52   : > { %s123_s21 = sld [smem:[%s1634_s1 + %s1636_s2]]  ;;  %p138_p10 = scmp.lt.s32.totalorder %s1033_s10, 9 }
  0x53   : > { %s1161_s28 = scalar_lea.sflag [#allocation10], %s118_s17  ;;  %p969_p13 = pneg %p1143_p8 }
  0x54   : > { %p1152_p11 = pnand %p808_p9, %p138_p10  ;;  %s972_s5 = scalar_lea.hbm %s1583_s6, 2048 }
  0x58   : > { %s835_s24 = sshll.u32 %s123_s21, 10 }
  0x59   : > { %s1159_s27 = scalar_lea.hbm %s1583_s6, %s835_s24 }
  0x5a   : > { %s967_s29 = scalar_lea.hbm %s1159_s27, 1024  ;;  %p973_p2 = scmp.lt.u32.totalorder %s1159_s27, %s1583_s6 }
  0x5b   : > { %p968_p12 = scmp.ne.s32.totalorder %s1159_s27, %s967_s29  ;;  %p974_p3 = scmp.lt.u32.totalorder %s972_s5, %s967_s29 }
  0x5c   : > { %p976_p6 = scmp.lt.u32.totalorder %s967_s29, %s1159_s27 }
  0x5d   : > { %p970_p0 = pnand %p969_p13, %p968_p12  ;;  %p975_p4 = por %p974_p3, %p973_p2 }
  0x5f   : > { %p971_p1 = pneg %p970_p0  ;;  %p977_p7 = por %p976_p6, %p975_p4 }
  0x61   : > { %p978_p9 = pnand %p977_p7, %p971_p1 }
  0x63   : > { %981 = shalt.err (!%p978_p9)
}
  0x64   : > { %s982_s14 = scalar_lea.vmem %s1150_s3, 1024  ;;  %s1041_s15 = smov [#allocation9]  }
  0x65   : > { %p983_p10 = scmp.ne.s32.totalorder %s1150_s3, %s982_s14  ;;  %s987_s17 = sshll.u32 %s1041_s15, 4  ;;  %s988_s17 = int_to_ptr.vmem [resolvable:$false] %s987_s17 }
  0x66   : > { %s989_s18 = scalar_lea.vmem %s988_s17, 2048  ;;  %p990_p5 = scmp.lt.s32.totalorder %s1150_s3, %s988_s17 }
  0x67   : > { %p985_p12 = pnand %p983_p10, %p969_p13  ;;  %p991_p2 = scmp.lt.s32.totalorder %s989_s18, %s982_s14 }
  0x69   : > { %p986_p0 = pneg %p985_p12  ;;  %p992_p3 = por %p991_p2, %p990_p5 }
  0x6b   : > { %p993_p4 = pnand %p992_p3, %p986_p0 }
  0x6d   : > { %996 = shalt.err (!%p993_p4)
}
  0x6e   : > { %s1042_s0 = smov 128   ;;  %s1043_s1 = smov 8  }
  0x6f   : > { %854 = dma.hbm_to_vmem [thread:$0]  (!%p1143_p8), %s1159_s27, 1024, %s1150_s3, %s1161_s28, %s1042_s0, %s1042_s0, %s1043_s1  }
  0x70   : > { %142 = sbr.rel (%p1152_p11) target bundleno = 357 (0x165), region = 24  ;;  %s144_s2 = sand.u32 (!%p1152_p11), 1, %s1025_s8  }
  0x71   : > { %s809_s21 = sshll.u32 (!%p1152_p11), %s144_s2, 6  ;;  %s145_s22 = scalar_lea.sflag (!%p1152_p11), [#allocation10], %s144_s2 }
  0x72   : > { %s1192_s24 = scalar_lea.vmem (!%p1152_p11), [#allocation9], %s809_s21  ;;  %p1594_p5 = scmp.ne.s32.totalorder (!%p1152_p11), %s1591_s16, 0 }
  0x77   : > { %1016 = dma.done.wait (%p1594_p5), %s145_s22, 1024  }
  0x78   : > { %1018 = vsyncadd (%p1594_p5), %s145_s22, 4294966272  ;;  %s1199_s25 = sshll.u32 %s1128_s11, 2  ;;  %v177_v0 = vlaneseq  ;;  %vm205_vm0 = vcmask 126976   ;;  %vm247_vm5 = vcmask 1041409   ;;  %vm249_vm10 = vcmask 1042434  }
  0x79   : > { %s1202_s19 = sld [smem:[#allocation5 + %s1199_s25]]  ;;  %s259_s23 = sadd.s32 1, %s1199_s25  ;;  %vm251_vm13 = vcmask 1043459  }
  0x7a   : > { %s1205_s3 = sld [smem:[#allocation6 + %s1199_s25]]  ;;  %s1220_s30 = sadd.s32 2, %s1199_s25  ;;  %v1237_v1 = vshrl.u32 %v177_v0, 7  ;;  %v1247_v8 = vand.u32 127, %v177_v0 }
  0x7b   : > { %s1208_s26 = sld [smem:[#allocation7 + %s259_s23]]  ;;  %s1279_s0 = sadd.s32 3, %s1199_s25 }
  0x7c   : > { %s1211_s16 = sld [smem:[#allocation7 + %s1199_s25]] }
  0x7d   : > { %s1213_s27 = sld [smem:[#allocation8 + %s259_s23]] }
  0x7e   : > { %s1215_s28 = sld [smem:[#allocation5 + %s259_s23]] }
  0x7f   : > { %s1217_s29 = sld [smem:[#allocation6 + %s259_s23]]  ;;  %p183_p8 = scmp.lt.s32.totalorder %s1202_s19, 11  ;;  %v194_v3 = vstv %s1202_s19 }
  0x80   : > { %s1223_s4 = sld [smem:[#allocation8 + %s1199_s25]]  ;;  %p813_p11 = scmp.gt.s32.totalorder %s1202_s19, 0  ;;  %v196_v4 = vstv %s1205_s3 }
  0x81   : > { %s1226_s5 = sld [smem:[#allocation7 + %s1220_s30]]  ;;  %v262_v11 = vstv %s1208_s26 }
  0x82   : > { %s1231_s10 = sld [smem:[#allocation8 + %s1220_s30]]  ;;  %v236_v7 = vstv %s1211_s16  ;;  %vm1283_vm4 = vcmp.ge.s32.totalorder %v1247_v8, %v262_v11 }
  0x83   : > { %s1234_s13 = sld [smem:[#allocation5 + %s1220_s30]]  ;;  %v264_v12 = vstv %s1213_s27  ;;  %vm1294_vm9 = vcmp.ge.s32.totalorder %v1247_v8, %v236_v7 }
  0x84   : > { %s184_s14 = scalar_select %p183_p8, %s1202_s19, 11  ;;  %v320_v14 = vstv %s1215_s28  ;;  %vm1289_vm6 = vcmp.lt.s32.totalorder %v1247_v8, %v264_v12 }
  0x85   : > { %p309_p13 = scmp.lt.s32.totalorder %s1215_s28, 11  ;;  %p818_p1 = scmp.gt.s32.totalorder %s1215_s28, 0  ;;  %v322_v15 = vstv %s1217_s29 }
  0x86   : > { %s1638_s14 = smov (!%p813_p11, %s184_s14), 0  ;;  %v238_v18 = vstv %s1223_s4  ;;  %s1317_s2 = sld [smem:[#allocation5 + %s1279_s0]] }
  0x87   : > { %s310_s15 = scalar_select %p309_p13, %s1215_s28, 11  ;;  %v192_v2 = vstv %s1638_s14  ;;  %v276_v19 = vstv %s1226_s5  ;;  %vm1310_vm12 = vcmp.lt.s32.totalorder %v1247_v8, %v238_v18 }
  0x88   : > { %s187_s17 = scalar_lea.vmem %s1192_s24, %s1638_s14 [#allocation9]  ;;  %v193_v6 = vadd.s32 %v192_v2, %v1237_v1  ;;  %v278_v20 = vstv %s1231_s10  ;;  %vm1326_vm14 = vcmp.ge.s32.totalorder %v1247_v8, %v276_v19  ;;  %s1338_s21 = sld [smem:[#allocation6 + %s1220_s30]] }
  0x89   : > { %v188_v5 = vld [vmem:[%s187_s17] sm:$0x1f]  ;;  %v189_v9 = vld [vmem:[%s187_s17 + $0x10] sm:$0x1f]  ;;  %s1640_s15 = smov (!%p818_p1, %s310_s15), 0  ;;  %p388_p6 = scmp.lt.s32.totalorder %s1234_s13, 11  ;;  %vm1331_vm15 = vcmp.lt.s32.totalorder %v1247_v8, %v278_v20  ;;  %v399_v36 = vstv %s1234_s13 }
  0x8a   : > { %v190_v10 = vld [vmem:[%s187_s17 + $0x20] sm:$0x1f]  ;;  %v191_v13 = vld [vmem:[%s187_s17 + $0x30] sm:$0x1f]  ;;  %vm195_vm1 = vcmp.ge.s32.totalorder %v193_v6, %v194_v3  ;;  %vm197_vm2 = vcmp.lt.s32.totalorder %v193_v6, %v196_v4  ;;  %v318_v17 = vstv %s1640_s15  ;;  %s1261_s18 = scalar_lea.vmem %s1192_s24, %s1640_s15 [#allocation9]  ;;  %p823_p7 = scmp.gt.s32.totalorder %s1234_s13, 0 }
  0x8b   : > { %vm1255_vm3 = vmand %vm195_vm1, %vm197_vm2  ;;  %v319_v24 = vadd.s32 %v318_v17, %v1237_v1  ;;  %v314_v34 = vld [vmem:[%s1261_s18] sm:$0x1f]  ;;  %v315_v38 = vld [vmem:[%s1261_s18 + $0x10] sm:$0x1f]  ;;  %s1303_s1 = scalar_select %p388_p6, %s1234_s13, 11  ;;  %vm255_vm1 = vcmask 125952  }
  0x8c   : > { %v201_v21 = vsel %vm1255_vm3, %v188_v5, -3.4028235e+38  ;;  %v202_v22 = vsel %vm1255_vm3, %v189_v9, -3.4028235e+38  ;;  %v203_v23 = vsel %vm1255_vm3, %v190_v10, -3.4028235e+38  ;;  %vm1356_vm2 = vmand %vm1283_vm4, %vm1289_vm6 }
  0x8d   : > { %v204_v25 = vsel %vm1255_vm3, %v191_v13, -3.4028235e+38  ;;  %v206_v26 = vsel %vm205_vm0, %v201_v21, -inf  ;;  %v213_v27 = vsel %vm205_vm0, %v202_v22, -inf  ;;  %v220_v28 = vsel %vm205_vm0, %v203_v23, -inf  ;;  %s1642_s1 = smov (!%p823_p7, %s1303_s1), 0  ;;  %vm1368_vm3 = vmand %vm1294_vm9, %vm1310_vm12 }
  0x8e   : > { %v207_v29 = vrot.slane %v206_v26, 4  ;;  %v214_v30 = vrot.slane %v213_v27, 4  ;;  %v221_v31 = vrot.slane %v220_v28, 4  ;;  %v227_v32 = vsel %vm205_vm0, %v204_v25, -inf  ;;  %v316_v39 = vld [vmem:[%s1261_s18 + $0x20] sm:$0x1f]  ;;  %s392_s19 = scalar_lea.vmem %s1192_s24, %s1642_s1 [#allocation9]  ;;  %vm1384_vm4 = vmand %vm1326_vm14, %vm1331_vm15 }
  0x8f   : > { %v228_v35 = vrot.slane %v227_v32, 4  ;;  %vm321_vm7 = vcmp.ge.s32.totalorder %v319_v24, %v320_v14  ;;  %vm323_vm8 = vcmp.lt.s32.totalorder %v319_v24, %v322_v15  ;;  %v317_v45 = vld [vmem:[%s1261_s18 + $0x30] sm:$0x1f]  ;;  %p467_p9 = scmp.lt.s32.totalorder %s1317_s2, 11  ;;  %p828_p10 = scmp.gt.s32.totalorder %s1317_s2, 0 }
  0x90   : > { %v208_v40 = vmax.f32 %v206_v26, %v207_v29  ;;  %v215_v41 = vmax.f32 %v213_v27, %v214_v30  ;;  %v222_v42 = vmax.f32 %v220_v28, %v221_v31  ;;  %vm1305_vm11 = vmand %vm321_vm7, %vm323_vm8  ;;  %s1361_s25 = sld [smem:[#allocation6 + %s1279_s0]]  ;;  %v397_v26 = vstv %s1642_s1 }
  0x91   : > { %v229_v46 = vmax.f32 %v227_v32, %v228_v35  ;;  %v327_v47 = vsel %vm1305_vm11, %v314_v34, -3.4028235e+38  ;;  %v328_v48 = vsel %vm1305_vm11, %v315_v38, -3.4028235e+38  ;;  %v329_v49 = vsel %vm1305_vm11, %v316_v39, -3.4028235e+38 }
  0x92   : > { %v209_v52 = vrot.slane %v208_v40, 2  ;;  %v216_v53 = vrot.slane %v215_v41, 2  ;;  %v223_v54 = vrot.slane %v222_v42, 2  ;;  %v330_v55 = vsel %vm1305_vm11, %v317_v45, -3.4028235e+38  ;;  %s468_s22 = scalar_select %p467_p9, %s1317_s2, 11 }
  0x93   : > { %v230_v56 = vrot.slane %v229_v46, 2  ;;  %v331_v57 = vsel %vm205_vm0, %v327_v47, -inf  ;;  %v338_v58 = vsel %vm205_vm0, %v328_v48, -inf  ;;  %v345_v59 = vsel %vm205_vm0, %v329_v49, -inf  ;;  %s1403_s3 = sld [smem:[#allocation7 + %s1279_s0]] }
  0x94   : > { %v210_v60 = vmax.f32 %v208_v40, %v209_v52  ;;  %v217_v61 = vmax.f32 %v215_v41, %v216_v53  ;;  %v224_v62 = vmax.f32 %v222_v42, %v223_v54  ;;  %v332_v63 = vrot.slane %v331_v57, 4  ;;  %s1644_s22 = smov (!%p828_p10, %s468_s22), 0  ;;  %s1406_s23 = sld [smem:[#allocation8 + %s1279_s0]]  ;;  %v393_v48 = vld [vmem:[%s392_s19] sm:$0x1f] }
  0x95   : > { %v231_v0 = vmax.f32 %v229_v46, %v230_v56  ;;  %v339_v2 = vrot.slane %v338_v58, 4  ;;  %v346_v3 = vrot.slane %v345_v59, 4  ;;  %v352_v4 = vsel %vm205_vm0, %v330_v55, -inf  ;;  %v394_v49 = vld [vmem:[%s392_s19 + $0x10] sm:$0x1f]  ;;  %s471_s26 = scalar_lea.vmem %s1192_s24, %s1644_s22 [#allocation9]  ;;  %s169_s24 = sld [smem:[#allocation4 + %s1128_s11]] }
  0x96   : > { %v211_v5 = vrot.slane %v210_v60, 1  ;;  %v218_v6 = vrot.slane %v217_v61, 1  ;;  %v225_v7 = vrot.slane %v224_v62, 1  ;;  %v333_v9 = vmax.f32 %v331_v57, %v332_v63  ;;  %v395_v52 = vld [vmem:[%s392_s19 + $0x20] sm:$0x1f] }
  0x97   : > { %v232_v10 = vrot.slane %v231_v0, 1  ;;  %v340_v11 = vmax.f32 %v338_v58, %v339_v2  ;;  %v347_v12 = vmax.f32 %v345_v59, %v346_v3  ;;  %v353_v13 = vrot.slane %v352_v4, 4  ;;  %v396_v53 = vld [vmem:[%s392_s19 + $0x30] sm:$0x1f] }
  0x98   : > { %v212_v14 = vmax.f32 %v210_v60, %v211_v5  ;;  %v219_v15 = vmax.f32 %v217_v61, %v218_v6  ;;  %v226_v16 = vmax.f32 %v224_v62, %v225_v7  ;;  %v334_v17 = vrot.slane %v333_v9, 2 }
  0x99   : > { %v233_v18 = vmax.f32 %v231_v0, %v232_v10  ;;  %v341_v20 = vrot.slane %v340_v11, 2  ;;  %v348_v21 = vrot.slane %v347_v12, 2  ;;  %v354_v22 = vmax.f32 %v352_v4, %v353_v13 }
  0x9a   : > { %v248_v23 = vsel %vm247_vm5, %v219_v15, %v212_v14  ;;  %v335_v25 = vmax.f32 %v333_v9, %v334_v17  ;;  %v401_v27 = vstv %s1338_s21  ;;  %v398_v35 = vadd.s32 %v397_v26, %v1237_v1 }
  0x9b   : > { %v250_v28 = vsel %vm249_vm10, %v226_v16, %v248_v23  ;;  %v342_v29 = vmax.f32 %v340_v11, %v341_v20  ;;  %v349_v30 = vmax.f32 %v347_v12, %v348_v21  ;;  %v355_v31 = vrot.slane %v354_v22, 2  ;;  %p170_p12 = scmp.lt.s32.totalorder %s169_s24, 7 }
  0x9c   : > { %v1378_v32 = vsel %vm251_vm13, %v233_v18, %v250_v28  ;;  %v336_v33 = vrot.slane %v335_v25, 1  ;;  %vm402_vm6 = vcmp.lt.s32.totalorder %v398_v35, %v401_v27  ;;  %vm400_vm7 = vcmp.ge.s32.totalorder %v398_v35, %v399_v36  ;;  %v472_v28 = vld [vmem:[%s471_s26] sm:$0x1f]  ;;  %v475_v36 = vld [vmem:[%s471_s26 + $0x30] sm:$0x1f] }
  0x9d   : > { %v269_v37 = vsel %vm1356_vm2, %v1378_v32, -3.4028235e+38  ;;  %v254_v38 = vsel %vm1368_vm3, %v1378_v32, -3.4028235e+38  ;;  %v343_v39 = vrot.slane %v342_v29, 1  ;;  %v350_v40 = vrot.slane %v349_v30, 1  ;;  %vm1413_vm8 = vmand %vm400_vm7, %vm402_vm6 }
  0x9e   : > { %v270_v41 = vsel %vm255_vm1, %v269_v37, -inf  ;;  %v256_v42 = vsel %vm255_vm1, %v254_v38, -inf  ;;  %v337_v43 = vmax.f32 %v335_v25, %v336_v33  ;;  %v356_v44 = vmax.f32 %v354_v22, %v355_v31  ;;  %v474_v35 = vld [vmem:[%s471_s26 + $0x20] sm:$0x1f]  ;;  %s1646_s24 = smov (!%p170_p12, %s169_s24), 7 }
  0x9f   : > { %271 = vmax.xlane.f32.xlu0 %v270_v41  ;;  %257 = vmax.xlane.f32.xlu1 %v256_v42  ;;  %v344_v45 = vmax.f32 %v342_v29, %v343_v39  ;;  %v351_v46 = vmax.f32 %v349_v30, %v350_v40  ;;  %v283_v47 = vsel %vm1384_vm4, %v1378_v32, -3.4028235e+38  ;;  %v476_v56 = vstv %s1644_s22  ;;  %v473_v29 = vld [vmem:[%s471_s26 + $0x10] sm:$0x1f]  ;;  %s836_s11 = sshll.u32 %s1646_s24, 4 }
  0xa0   : > { %v357_v50 = vrot.slane %v356_v44, 1  ;;  %v284_v51 = vsel %vm255_vm1, %v283_v47, -inf  ;;  %v480_v57 = vstv %s1361_s25  ;;  %v406_v60 = vsel %vm1413_vm8, %v393_v48, -3.4028235e+38  ;;  %s174_s28 = scalar_lea.vmem %s1584_s7, %s836_s11 }
  0xa1   : > { %v363_v54 = vsel %vm247_vm5, %v344_v45, %v337_v43  ;;  %v407_v61 = vsel %vm1413_vm8, %v394_v49, -3.4028235e+38  ;;  %v408_v62 = vsel %vm1413_vm8, %v395_v52, -3.4028235e+38  ;;  %v409_v63 = vsel %vm1413_vm8, %v396_v53, -3.4028235e+38 }
  0xa2   : > { %v358_v58 = vmax.f32 %v356_v44, %v357_v50  ;;  %v364_v59 = vsel %vm249_vm10, %v351_v46, %v363_v54  ;;  %v410_v0 = vsel %vm205_vm0, %v406_v60, -inf  ;;  %v417_v2 = vsel %vm205_vm0, %v407_v61, -inf }
  0xa3   : > { %285 = vmax.xlane.f32.xlu1 %v284_v51  ;;  %v411_v4 = vrot.slane %v410_v0, 4  ;;  %v418_v5 = vrot.slane %v417_v2, 4  ;;  %v424_v6 = vsel %vm205_vm0, %v408_v62, -inf  ;;  %v477_v11 = vadd.s32 %v476_v56, %v1237_v1 }
  0xa4   : > { %v1431_v3 = vsel %vm251_vm13, %v358_v58, %v364_v59  ;;  %v290_v15 = vstv %s1403_s3  ;;  %v425_v17 = vrot.slane %v424_v6, 4  ;;  %v431_v18 = vsel %vm205_vm0, %v409_v63, -inf }
  0xa5   : > { %v367_v7 = vsel %vm1368_vm3, %v1431_v3, -3.4028235e+38  ;;  %v371_v9 = vsel %vm1356_vm2, %v1431_v3, -3.4028235e+38  ;;  %v375_v10 = vsel %vm1384_vm4, %v1431_v3, -3.4028235e+38  ;;  %v412_v14 = vmax.f32 %v410_v0, %v411_v4 }
  0xa6   : > { %v368_v12 = vsel %vm255_vm1, %v367_v7, -inf  ;;  %v376_v13 = vsel %vm255_vm1, %v375_v10, -inf  ;;  %v419_v16 = vmax.f32 %v417_v2, %v418_v5  ;;  %v292_v20 = vstv %s1406_s23 }
  0xa7   : > { %369 = vmax.xlane.f32.xlu0 %v368_v12  ;;  %377 = vmax.xlane.f32.xlu1 %v376_v13  ;;  %v372_v21 = vsel %vm255_vm1, %v371_v9, -inf  ;;  %v413_v22 = vrot.slane %v412_v14, 2  ;;  %v432_v23 = vrot.slane %v431_v18, 4  ;;  %vm1452_vm9 = vcmp.lt.s32.totalorder %v477_v11, %v480_v57 }
  0xa8   : > { %v420_v26 = vrot.slane %v419_v16, 2  ;;  %v426_v27 = vmax.f32 %v424_v6, %v425_v17  ;;  %v478_v30 = vstv %s1317_s2  ;;  %vm1458_vm12 = vcmp.ge.s32.totalorder %v1247_v8, %v290_v15 }
  0xa9   : > { %v414_v31 = vmax.f32 %v412_v14, %v413_v22  ;;  %v433_v33 = vmax.f32 %v431_v18, %v432_v23  ;;  %vm479_vm11 = vcmp.ge.s32.totalorder %v477_v11, %v478_v30  ;;  %vm1463_vm14 = vcmp.lt.s32.totalorder %v1247_v8, %v292_v20 }
  0xaa   : > { %v421_v37 = vmax.f32 %v419_v16, %v420_v26  ;;  %v427_v38 = vrot.slane %v426_v27, 2  ;;  %vm1469_vm15 = vmand %vm479_vm11, %vm1452_vm9 }
  0xab   : > { %373 = vmax.xlane.f32.xlu0 %v372_v21  ;;  %v415_v42 = vrot.slane %v414_v31, 1  ;;  %v434_v43 = vrot.slane %v433_v33, 2  ;;  %v485_v44 = vsel %vm1469_vm15, %v472_v28, -3.4028235e+38  ;;  %v486_v45 = vsel %vm1469_vm15, %v473_v29, -3.4028235e+38  ;;  %vm1490_vm6 = vmand %vm1458_vm12, %vm1463_vm14 }
  0xac   : > { %v422_v46 = vrot.slane %v421_v37, 1  ;;  %v428_v47 = vmax.f32 %v426_v27, %v427_v38  ;;  %v487_v8 = vsel %vm1469_vm15, %v474_v35, -3.4028235e+38  ;;  %v488_v48 = vsel %vm1469_vm15, %v475_v36, -3.4028235e+38 }
  0xad   : > { %v416_v49 = vmax.f32 %v414_v31, %v415_v42  ;;  %v435_v50 = vmax.f32 %v433_v33, %v434_v43  ;;  %v489_v51 = vsel %vm205_vm0, %v485_v44, -inf  ;;  %v496_v52 = vsel %vm205_vm0, %v486_v45, -inf }
  0xae   : > { %v423_v53 = vmax.f32 %v421_v37, %v422_v46  ;;  %v429_v54 = vrot.slane %v428_v47, 1  ;;  %v490_v55 = vrot.slane %v489_v51, 4  ;;  %v497_v56 = vrot.slane %v496_v52, 4 }
  0xaf   : > { %v436_v57 = vrot.slane %v435_v50, 1  ;;  %v503_v58 = vsel %vm205_vm0, %v487_v8, -inf  ;;  %v510_v59 = vsel %vm205_vm0, %v488_v48, -inf  ;;  %v379_v11 = vsel %vm1490_vm6, %v1431_v3, -3.4028235e+38 }
  0xb0   : > { %v430_v60 = vmax.f32 %v428_v47, %v429_v54  ;;  %v442_v61 = vsel %vm247_vm5, %v423_v53, %v416_v49  ;;  %v491_v63 = vmax.f32 %v489_v51, %v490_v55  ;;  %v498_v0 = vmax.f32 %v496_v52, %v497_v56 }
  0xb1   : > { %v437_v2 = vmax.f32 %v435_v50, %v436_v57  ;;  %v504_v4 = vrot.slane %v503_v58, 4  ;;  %v511_v5 = vrot.slane %v510_v59, 4  ;;  %v380_v26 = vsel %vm255_vm1, %v379_v11, -inf }
  0xb2   : > { %v443_v6 = vsel %vm249_vm10, %v430_v60, %v442_v61  ;;  %v492_v7 = vrot.slane %v491_v63, 2  ;;  %v499_v9 = vrot.slane %v498_v0, 2  ;;  %v297_v19 = vsel %vm1490_vm6, %v1378_v32, -3.4028235e+38 }
  0xb3   : > { %v444_v10 = vsel %vm251_vm13, %v437_v2, %v443_v6  ;;  %v505_v12 = vmax.f32 %v503_v58, %v504_v4  ;;  %v512_v13 = vmax.f32 %v510_v59, %v511_v5  ;;  %v298_v34 = vsel %vm255_vm1, %v297_v19, -inf }
  0xb4   : > { %v450_v14 = vsel %vm1356_vm2, %v444_v10, -3.4028235e+38  ;;  %v446_v15 = vsel %vm1368_vm3, %v444_v10, -3.4028235e+38  ;;  %v454_v16 = vsel %vm1384_vm4, %v444_v10, -3.4028235e+38  ;;  %v493_v17 = vmax.f32 %v491_v63, %v492_v7 }
  0xb5   : > { %v451_v18 = vsel %vm255_vm1, %v450_v14, -inf  ;;  %v447_v20 = vsel %vm255_vm1, %v446_v15, -inf  ;;  %v500_v21 = vmax.f32 %v498_v0, %v499_v9  ;;  %v506_v22 = vrot.slane %v505_v12, 2 }
  0xb6   : > { %452 = vmax.xlane.f32.xlu0 %v451_v18  ;;  %448 = vmax.xlane.f32.xlu1 %v447_v20  ;;  %v494_v3 = vrot.slane %v493_v17, 1  ;;  %v513_v23 = vrot.slane %v512_v13, 2  ;;  %v455_v25 = vsel %vm255_vm1, %v454_v16, -inf  ;;  %v458_v41 = vsel %vm1490_vm6, %v444_v10, -3.4028235e+38 }
  0xb7   : > { %v501_v27 = vrot.slane %v500_v21, 1  ;;  %v507_v29 = vmax.f32 %v505_v12, %v506_v22  ;;  %v459_v47 = vsel %vm255_vm1, %v458_v41, -inf  ;;  %v1044_v55 = vmov 1966171168  }
  0xb8   : > { %v495_v28 = vmax.f32 %v493_v17, %v494_v3  ;;  %v514_v30 = vmax.f32 %v512_v13, %v513_v23  ;;  %v546_v32 = vunpack.c.l.s4 %v1044_v55  ;;  %vm301_vm0 = vcmask 7168  }
  0xb9   : > { %v502_v31 = vmax.f32 %v500_v21, %v501_v27  ;;  %v508_v33 = vrot.slane %v507_v29, 1  ;;  %v650_v17 = vsub.s32 0, %v1237_v1 }
  0xba   : > { %456 = vmax.xlane.f32.xlu0 %v455_v25  ;;  %381 = vmax.xlane.f32.xlu1 %v380_v26  ;;  %v515_v35 = vrot.slane %v514_v30, 1  ;;  %v547_v56 = vunpack.c.0.s8 %v546_v32 }
  0xbb   : > { %v521_v36 = vsel %vm247_vm5, %v502_v31, %v495_v28  ;;  %v509_v37 = vmax.f32 %v507_v29, %v508_v33  ;;  %vm305_vm5 = vcmask 23552  }
  0xbc   : > { %v516_v38 = vmax.f32 %v514_v30, %v515_v35  ;;  %v550_v60 = vsub.s32 %v547_v56, %v1237_v1 }
  0xbd   : > { %v522_v39 = vsel %vm249_vm10, %v509_v37, %v521_v36  ;;  %vm303_vm10 = vcmask 15360  }
  0xbe   : > { %v523_v40 = vsel %vm251_vm13, %v516_v38, %v522_v39  ;;  %vm708_vm13 = vcmask 1040384  }
  0xbf   : > { %v529_v42 = vsel %vm1356_vm2, %v523_v40, -3.4028235e+38  ;;  %v525_v43 = vsel %vm1368_vm3, %v523_v40, -3.4028235e+38  ;;  %v533_v44 = vsel %vm1384_vm4, %v523_v40, -3.4028235e+38 }
  0xc0   : > { %v530_v45 = vsel %vm255_vm1, %v529_v42, -inf  ;;  %v526_v46 = vsel %vm255_vm1, %v525_v43, -inf  ;;  %v534_v8 = vsel %vm255_vm1, %v533_v44, -inf  ;;  %v537_v24 = vsel %vm1490_vm6, %v523_v40, -3.4028235e+38 }
  0xc1   : > { %531 = vmax.xlane.f32.xlu0 %v530_v45  ;;  %527 = vmax.xlane.f32.xlu1 %v526_v46  ;;  %v538_v48 = vsel %vm255_vm1, %v537_v24, -inf  ;;  %vm713_vm1 = vcmask 1041408   ;;  %vm718_vm2 = vcmask 1042432   ;;  %vm723_vm3 = vcmask 27648  }
  0xc5   : > { %460 = vmax.xlane.f32.xlu0 %v459_v47  ;;  %535 = vmax.xlane.f32.xlu1 %v534_v8 }
  0xc9   : > { %299 = vmax.xlane.f32.xlu0 %v298_v34  ;;  %539 = vmax.xlane.f32.xlu1 %v538_v48 }
 0x12c   : > { %v272_v49 = vpop.xlane.xlu0 %271  ;;  %v258_v50 = vpop.xlane.xlu1 %257 }
 0x12d   : > { %v302_v15 = vsel %vm301_vm0, %v258_v50, %v272_v49 }
 0x130   : > { %v286_v52 = vpop.xlane.xlu1 %285 }
 0x131   : > { %v304_v18 = vsel %vm303_vm10, %v302_v15, %v286_v52 }
 0x134   : > { %v370_v51 = vpop.xlane.xlu0 %369  ;;  %v378_v54 = vpop.xlane.xlu1 %377 }
 0x138   : > { %v374_v53 = vpop.xlane.xlu0 %373 }
 0x139   : > { %v383_v59 = vsel %vm301_vm0, %v370_v51, %v374_v53 }
 0x13a   : > { %v384_v61 = vsel %vm303_vm10, %v383_v59, %v378_v54 }
 0x143   : > { %v453_v57 = vpop.xlane.xlu0 %452  ;;  %v449_v58 = vpop.xlane.xlu1 %448 }
 0x144   : > { %v462_v7 = vsel %vm301_vm0, %v449_v58, %v453_v57 }
 0x147   : > { %v382_v62 = vpop.xlane.xlu1 %381  ;;  %v457_v0 = vpop.xlane.xlu0 %456 }
 0x148   : > { %v385_v63 = vsel %vm305_vm5, %v384_v61, %v382_v62  ;;  %v463_v10 = vsel %vm303_vm10, %v462_v7, %v457_v0 }
 0x149   : > { %v580_v2 = vrot.slane %v385_v63, %v550_v60 }
 0x14b   : > { %v581_v4 = vcombine.high %v580_v2, %v580_v2  ;;  %v588_v9 = vrot.slane %v580_v2, %v550_v60 }
 0x14d   : > { %v595_v11 = vrot.slane %v581_v4, %v550_v60  ;;  %v596_v20 = vcombine.high %v588_v9, %v588_v9  ;;  %v651_v33 = vrot.slane %v588_v9, %v650_v17 }
 0x14e   : > { %v532_v5 = vpop.xlane.xlu0 %531  ;;  %v528_v6 = vpop.xlane.xlu1 %527 }
 0x14f   : > { %v541_v21 = vsel %vm301_vm0, %v528_v6, %v532_v5  ;;  %v597_v3 = vcombine.high %v595_v11, %v595_v11  ;;  %v655_v35 = vrot.slane %v595_v11, %v650_v17  ;;  %v659_v37 = vrot.slane %v596_v20, %v650_v17 }
 0x151   : > { %v663_v38 = vrot.slane %v597_v3, %v650_v17 }
 0x152   : > { %v461_v12 = vpop.xlane.xlu0 %460  ;;  %v536_v13 = vpop.xlane.xlu1 %535 }
 0x153   : > { %v464_v14 = vsel %vm305_vm5, %v463_v10, %v461_v12  ;;  %v542_v25 = vsel %vm303_vm10, %v541_v21, %v536_v13 }
 0x154   : > { %v605_v16 = vrot.slane %v464_v14, %v550_v60 }
 0x156   : > { %v606_v22 = vcombine.high %v605_v16, %v605_v16  ;;  %v613_v23 = vrot.slane %v605_v16, %v550_v60  ;;  %v300_v26 = vpop.xlane.xlu0 %299  ;;  %v540_v27 = vpop.xlane.xlu1 %539 }
 0x157   : > { %v306_v28 = vsel %vm305_vm5, %v304_v18, %v300_v26  ;;  %v543_v1 = vsel %vm305_vm5, %v542_v25, %v540_v27 }
 0x158   : > { %v620_v29 = vrot.slane %v606_v22, %v550_v60  ;;  %v621_v30 = vcombine.high %v613_v23, %v613_v23  ;;  %v551_v31 = vrot.slane %v306_v28, %v550_v60  ;;  %v630_v36 = vrot.slane %v543_v1, %v550_v60 }
 0x159   : > { %v671_v41 = vrot.slane %v613_v23, %v650_v17 }
 0x15a   : > { %v622_v39 = vcombine.high %v620_v29, %v620_v29  ;;  %v552_v40 = vcombine.high %v551_v31, %v551_v31  ;;  %v559_v42 = vrot.slane %v551_v31, %v550_v60  ;;  %v631_v43 = vcombine.high %v630_v36, %v630_v36 }
 0x15b   : > { %v638_v44 = vrot.slane %v630_v36, %v550_v60  ;;  %v675_v45 = vrot.slane %v620_v29, %v650_v17  ;;  %v679_v46 = vrot.slane %v621_v30, %v650_v17 }
 0x15c   : > { %v683_v47 = vrot.slane %v622_v39, %v650_v17  ;;  %v566_v8 = vrot.slane %v552_v40, %v550_v60  ;;  %v567_v19 = vcombine.high %v559_v42, %v559_v42  ;;  %v709_v24 = vsel %vm708_vm13, %v559_v42, %v651_v33 }
 0x15d   : > { %v645_v34 = vrot.slane %v631_v43, %v550_v60  ;;  %v646_v48 = vcombine.high %v638_v44, %v638_v44  ;;  %v714_v51 = vsel %vm713_vm1, %v709_v24, %v671_v41  ;;  %v691_v52 = vrot.slane %v638_v44, %v650_v17 }
 0x15e   : > { %v568_v49 = vcombine.high %v566_v8, %v566_v8  ;;  %v710_v50 = vsel %vm708_vm13, %v566_v8, %v655_v35  ;;  %v711_v53 = vsel %vm708_vm13, %v567_v19, %v659_v37 }
 0x15f   : > { %v715_v54 = vsel %vm713_vm1, %v710_v50, %v675_v45  ;;  %v647_v55 = vcombine.high %v645_v34, %v645_v34  ;;  %v695_v32 = vrot.slane %v645_v34, %v650_v17  ;;  %v716_v57 = vsel %vm713_vm1, %v711_v53, %v679_v46 }
 0x160   : > { %v712_v56 = vsel %vm708_vm13, %v568_v49, %v663_v38  ;;  %v699_v58 = vrot.slane %v646_v48, %v650_v17  ;;  %v719_v59 = vsel %vm718_vm2, %v714_v51, %v691_v52 }
 0x161   : > { %v717_v60 = vsel %vm713_vm1, %v712_v56, %v683_v47  ;;  %v703_v61 = vrot.slane %v647_v55, %v650_v17  ;;  %v720_v62 = vsel %vm718_vm2, %v715_v54, %v695_v32  ;;  %724 = vst.msk [vmem:[%s174_s28] sm:$0xf] %vm723_vm3, %v719_v59 }
 0x162   : > { %v721_v63 = vsel %vm718_vm2, %v716_v57, %v699_v58  ;;  %725 = vst.msk [vmem:[%s174_s28 + $0x4] sm:$0xf] %vm723_vm3, %v720_v62 }
 0x163   : > { %v722_v0 = vsel %vm718_vm2, %v717_v60, %v703_v61  ;;  %726 = vst.msk [vmem:[%s174_s28 + $0x8] sm:$0xf] %vm723_vm3, %v721_v63 }
 0x164   : > { %727 = vst.msk [vmem:[%s174_s28 + $0xc] sm:$0xf] %vm723_vm3, %v722_v0 }
 0x165 PF: > { %p41_p0 = scmp.ge.s32.totalorder %s1130_s12, 10   ;;  %s1629_s5 = smov %s1025_s8 }
 0x166   : > { %s1630_s8 = smov %s1029_s9  ;;  %s1631_s9 = smov %s1148_s20 }
 0x167   : > { %s1632_s10 = smov %s1130_s12  ;;  %43 = sbr.rel (!%p41_p0) target bundleno = 67 (0x43), region = 68 }
 0x16e   :  { %752 = vsyncpa [#allocation10], 1 }
 0x16f   :  { %754 = vsyncpa [#allocation10 + $0x1], 1 }

</bundles_post_ra>
